<compile_context>
chip_gen: v6e
topology: v6e:2x2x1
jax: 0.10.0
libtpu: 0.0.40
codegen_flags: <defaults>
</compile_context>

<pallas_src>
import functools

import jax
import jax.numpy as jnp
from jax.experimental import pallas as pl
from jax.experimental.pallas import tpu as pltpu


def _round_up(x, m):
    return (x + m - 1) // m * m


def _pick_row_tile(total, cap):
    """Largest divisor of `total` that is <= cap and a multiple of 8
    (falls back to the full extent, i.e. a single tile)."""
    if total <= cap:
        return total
    for t in range(cap - cap % 8, 7, -8):
        if total % t == 0:
            return t
    return total


# ---------------------------------------------------------------------------
# Fused 3x3 stride-2 conv (+bias, +ReLU) kernel.
# ---------------------------------------------------------------------------
def _conv3x3_s2_kernel(xee_ref, xeo_ref, xoe_ref, xoo_ref, w_ref, b_ref, o_ref,
                       acc_ref, *, th, wo_pad, relu):
    """One (batch, output-row-tile) per grid step.

    Inputs are the zero-padded image split into its four stride-2 phases
    (even/odd row x even/odd col), windowed to this row tile, so every one of
    the nine conv taps is a contiguous 2-D window.  Each tap is one whole-tile
    (th*Wo, Cin)@(Cin, Cout) MXU dot accumulated in f32 VMEM scratch.
    """
    phases = ((xee_ref[0, 0], xeo_ref[0, 0]),      # row-parity 0: (even, odd col)
              (xoe_ref[0, 0], xoo_ref[0, 0]))      # row-parity 1
    acc_ref[...] = jnp.zeros_like(acc_ref)
    for dh in range(3):
        for dw in range(3):
            ph = phases[dh % 2][dw % 2]            # (th+1, wo_pad+1, Cin)
            r0, c0 = dh // 2, dw // 2
            tap = ph[r0:r0 + th, c0:c0 + wo_pad, :]          # (th, wo_pad, Cin)
            a2 = tap.reshape(th * wo_pad, tap.shape[-1])     # layout-preserving
            acc_ref[...] += jnp.dot(a2, w_ref[dh * 3 + dw],
                                    preferred_element_type=jnp.float32)
    res = acc_ref[...] + b_ref[...]
    if relu:
        res = jnp.maximum(res, 0.0)
    o_ref[0] = res.astype(o_ref.dtype)


def _make_phases(x_nhwc, wo_pad):
    """Build the four stride-2 phases of the zero-padded input directly from x
    (no full-resolution padded copy).  Each phase: (N, Ho+1, wo_pad+1, Cin)."""
    N, H, W, C = x_nhwc.shape
    Ho, Wo = H // 2, W // 2
    xb = x_nhwc.astype(jnp.bfloat16)
    extra = wo_pad - Wo

    def pad(p, top, bottom, left, right):
        return jnp.pad(p, ((0, 0), (top, bottom), (left, right + extra), (0, 0)))

    x_ee = pad(xb[:, 1::2, 1::2, :], 1, 0, 1, 0)
    x_eo = pad(xb[:, 1::2, 0::2, :], 1, 0, 0, 1)
    x_oe = pad(xb[:, 0::2, 1::2, :], 0, 1, 1, 0)
    x_oo = pad(xb[:, 0::2, 0::2, :], 0, 1, 0, 1)
    return x_ee, x_eo, x_oe, x_oo


def conv3x3_s2_relu(x_nhwc, w_khkwcico, bias, relu=True):
    """3x3 stride-2 pad-1 conv (+ReLU); w_khkwcico: (3, 3, Cin, Cout)."""
    N, H, W, Cin = x_nhwc.shape
    assert H % 2 == 0 and W % 2 == 0
    kh, kw, cin, cout = w_khkwcico.shape
    assert (kh, kw, cin) == (3, 3, Cin)
    Ho, Wo = H // 2, W // 2
    wo_pad = _round_up(Wo, 8)
    th = _pick_row_tile(Ho, cap=64)
    n_t = Ho // th

    phases = _make_phases(x_nhwc, wo_pad)          # 4x (N, Ho+1, wo_pad+1, Cin)
    if n_t == 1:
        phases = [p[:, None] for p in phases]
    else:
        # Overlapping (th+1)-row windows per tile (1 duplicated row per tile).
        phases = [jnp.stack([p[:, t * th: t * th + th + 1] for t in range(n_t)],
                            axis=1) for p in phases]
    # each phase: (N, n_t, th+1, wo_pad+1, Cin)

    w9 = w_khkwcico.astype(jnp.bfloat16).reshape(9, cin, cout)
    b2 = bias.astype(jnp.float32).reshape(1, cout)

    phase_spec = pl.BlockSpec((1, 1, th + 1, wo_pad + 1, cin),
                              lambda n, t: (n, t, 0, 0, 0))
    kernel = functools.partial(_conv3x3_s2_kernel, th=th, wo_pad=wo_pad,
                               relu=relu)
    flops = 2 * N * Ho * wo_pad * 9 * cin * cout
    bytes_accessed = (4 * N * n_t * (th + 1) * (wo_pad + 1) * cin * 2
                      + 9 * cin * cout * 2 + cout * 4
                      + N * Ho * wo_pad * cout * 2)

    out = pl.pallas_call(
        kernel,
        out_shape=jax.ShapeDtypeStruct((N, Ho * wo_pad, cout), jnp.bfloat16),
        grid=(N, n_t),
        in_specs=[phase_spec, phase_spec, phase_spec, phase_spec,
                  pl.BlockSpec((9, cin, cout), lambda n, t: (0, 0, 0)),
                  pl.BlockSpec((1, cout), lambda n, t: (0, 0))],
        out_specs=pl.BlockSpec((1, th * wo_pad, cout), lambda n, t: (n, t, 0)),
        scratch_shapes=[pltpu.VMEM((th * wo_pad, cout), jnp.float32)],
        compiler_params=pltpu.CompilerParams(
            dimension_semantics=("parallel", "parallel"),
            vmem_limit_bytes=32 * 1024 * 1024),
        cost_estimate=pl.CostEstimate(flops=flops, transcendentals=0,
                                      bytes_accessed=bytes_accessed),
    )(*phases, w9, b2)

    out = out.reshape(N, Ho, wo_pad, cout)[:, :, :Wo, :]
    return out


# ---------------------------------------------------------------------------
# Fused 1x1 head + separable bilinear resize (align_corners=False) kernel.
# ---------------------------------------------------------------------------
def _interp_matrix(out_size, in_size):
    """1-D bilinear interpolation matrix, align_corners=False, rows sum to 1."""
    scale = in_size / out_size
    i = jnp.arange(out_size, dtype=jnp.float32)
    src = jnp.clip((i + 0.5) * scale - 0.5, 0.0, float(in_size - 1))
    p0 = jnp.floor(src).astype(jnp.int32)
    p1 = jnp.minimum(p0 + 1, in_size - 1)
    w1 = src - p0.astype(jnp.float32)
    w0 = 1.0 - w1
    rows = jnp.arange(out_size)
    A = jnp.zeros((out_size, in_size), jnp.float32)
    A = A.at[rows, p0].add(w0)
    A = A.at[rows, p1].add(w1)
    return A


def _head_resize_kernel(feat_ref, ah_ref, mh_ref, mw_ref, bias_ref, o_ref):
    """Per (batch, out-row tile): H-pass -> 1x1 head -> W-pass, all in VMEM.

    feat_ref : (1, Hin, Win*C) bf16 features (flattened width x channels)
    ah_ref   : (th, Hin)            H-interp rows for this tile
    mh_ref   : (Win*C, Win*nc)      kron(I_Win, wh)   -- 1x1 head per column
    mw_ref   : (Win*nc, out_w*nc)   kron(A_w^T, I_nc) -- W-interp per class
    Everything stays f32 between passes; three plain 2-D MXU dots, no
    in-kernel reshapes or transposes.
    """
    f2 = feat_ref[0].astype(jnp.float32)                      # (Hin, Win*C)
    t0 = jnp.dot(ah_ref[...], f2,
                 preferred_element_type=jnp.float32)          # (th, Win*C)
    z = jnp.dot(t0, mh_ref[...],
                preferred_element_type=jnp.float32) + bias_ref[...]  # (th, Win*nc)
    o = jnp.dot(z, mw_ref[...],
                preferred_element_type=jnp.float32)           # (th, out_w*nc)
    o_ref[0] = o.astype(o_ref.dtype)


def head_resize_fused(feat_nhwc, wh, bh, out_h, out_w):
    """1x1-conv head + bilinear upsample to (out_h, out_w); returns NCHW f32."""
    N, Hin, Win, C = feat_nhwc.shape
    nc = wh.shape[1]

    A_h = _interp_matrix(out_h, Hin)                          # (out_h, Hin)
    A_w = _interp_matrix(out_w, Win)                          # (out_w, Win)
    Mh = jnp.kron(jnp.eye(Win, dtype=jnp.float32),
                  wh.astype(jnp.float32))                     # (Win*C, Win*nc)
    Mw = jnp.kron(A_w.T, jnp.eye(nc, dtype=jnp.float32))      # (Win*nc, out_w*nc)
    bias_t = jnp.tile(bh.astype(jnp.float32), Win).reshape(1, Win * nc)

    feat2 = feat_nhwc.reshape(N, Hin, Win * C)                # row-major, free

    th = _pick_row_tile(out_h, cap=256)
    n_t = out_h // th

    flops = 2 * N * out_h * (Hin * Win * C
                             + Win * C * Win * nc
                             + Win * nc * out_w * nc)
    bytes_accessed = (N * Hin * Win * C * feat2.dtype.itemsize
                      + N * out_h * out_w * nc * 4
                      + (out_h * Hin + Win * C * Win * nc
                         + Win * nc * out_w * nc + Win * nc) * 4)

    out = pl.pallas_call(
        _head_resize_kernel,
        out_shape=jax.ShapeDtypeStruct((N, out_h, out_w * nc), jnp.float32),
        grid=(N, n_t),
        in_specs=[
            pl.BlockSpec((1, Hin, Win * C), lambda n, t: (n, 0, 0)),
            pl.BlockSpec((th, Hin), lambda n, t: (t, 0)),
            pl.BlockSpec((Win * C, Win * nc), lambda n, t: (0, 0)),
            pl.BlockSpec((Win * nc, out_w * nc), lambda n, t: (0, 0)),
            pl.BlockSpec((1, Win * nc), lambda n, t: (0, 0)),
        ],
        out_specs=pl.BlockSpec((1, th, out_w * nc), lambda n, t: (n, t, 0)),
        compiler_params=pltpu.CompilerParams(
            dimension_semantics=("parallel", "parallel"),
            vmem_limit_bytes=32 * 1024 * 1024),
        cost_estimate=pl.CostEstimate(flops=flops, transcendentals=0,
                                      bytes_accessed=bytes_accessed),
    )(feat2, A_h, Mh, Mw, bias_t)

    out = out.reshape(N, out_h, out_w, nc)
    return jnp.transpose(out, (0, 3, 1, 2))                   # NCHW


# ---------------------------------------------------------------------------
# Model
# ---------------------------------------------------------------------------
class HRNetPallas:
    """Simplified HRNet backbone + 1x1-conv head, Pallas-backed forward."""

    def __init__(self, in_channels=4, stem_channels=16, dec_channels=32,
                 num_classes=5, seed=0):
        key = jax.random.PRNGKey(seed)
        k1, k2, k3 = jax.random.split(key, 3)
        fan1 = 3 * 3 * in_channels
        fan2 = 3 * 3 * stem_channels
        self.w1 = jax.random.normal(k1, (3, 3, in_channels, stem_channels),
                                    jnp.float32) / jnp.sqrt(fan1)
        self.b1 = jnp.zeros((stem_channels,), jnp.float32)
        self.w2 = jax.random.normal(k2, (3, 3, stem_channels, dec_channels),
                                    jnp.float32) / jnp.sqrt(fan2)
        self.b2 = jnp.zeros((dec_channels,), jnp.float32)
        self.wh = jax.random.normal(k3, (dec_channels, num_classes),
                                    jnp.float32) / jnp.sqrt(dec_channels)
        self.bh = jnp.zeros((num_classes,), jnp.float32)
        self.dec_channels = dec_channels
        self.num_classes = num_classes

    def _encoder(self, x_nhwc):
        f1 = conv3x3_s2_relu(x_nhwc, self.w1, self.b1, relu=True)   # stride 2
        f2 = conv3x3_s2_relu(f1, self.w2, self.b2, relu=True)       # stride 4
        return [f1, f2]

    def forward(self, x_nchw):
        # NCHW (PyTorch convention) -> NHWC for the kernels.
        x = jnp.transpose(x_nchw, (0, 2, 3, 1)).astype(jnp.float32)
        feats = self._encoder(x)
        feat = feats[-1]                                             # deepest
        # Fused 1x1 head + bilinear upsample to input resolution.
        # (head-before-resize is exact: the head is affine and every
        #  interpolation row sums to 1.)
        logits = head_resize_fused(feat, self.wh, self.bh,
                                   x_nchw.shape[2], x_nchw.shape[3])
        return logits                                                # NCHW


# ---------------------------------------------------------------------------
if __name__ == "__main__":
    key = jax.random.PRNGKey(0)
    x = jax.random.normal(key, (2, 4, 16, 16), jnp.float32)   # NCHW input

    model = HRNetPallas(in_channels=4, stem_channels=16, dec_channels=32,
                        num_classes=5, seed=0)
    forward_fn = jax.jit(model.forward)
    out = forward_fn(x)
    out = jax.block_until_ready(out)

    assert out.shape == (2, 5, 16, 16), out.shape
    assert bool(jnp.all(jnp.isfinite(out)))
    print("KERNEL_OK")
</pallas_src>

<mosaic_0001>
module attributes {stable_mosaic.version = 11 : i64} {
  func.func private @main(%arg0: i32) attributes {dimension_semantics = [#tpu.dimension_semantics<core_parallel>], iteration_bounds = array<i64: 2>, tpu.core_type = #tpu.core_type<sc_scalar_subcore>, window_params = []} {
    return
  }
}

module attributes {stable_mosaic.version = 11 : i64} {
  func.func private @main(%arg0: i32) attributes {dimension_semantics = [#tpu.dimension_semantics<core_parallel>], iteration_bounds = array<i64: 2>, tpu.core_type = #tpu.core_type<sc_scalar_subcore>, window_params = []} {
    return
  }
}

module attributes {stable_mosaic.version = 11 : i64} {
  func.func @_conv3x3_s2_kernel(%arg0: i32, %arg1: i32, %arg2: memref<1x1x9x9x4xbf16, #tpu.memory_space<vmem>>, %arg3: memref<1x1x9x9x4xbf16, #tpu.memory_space<vmem>>, %arg4: memref<1x1x9x9x4xbf16, #tpu.memory_space<vmem>>, %arg5: memref<1x1x9x9x4xbf16, #tpu.memory_space<vmem>>, %arg6: memref<9x4x16xbf16, #tpu.memory_space<vmem>>, %arg7: memref<1x16xf32, #tpu.memory_space<vmem>>, %arg8: memref<1x64x16xbf16, #tpu.memory_space<vmem>>, %arg9: memref<64x16xf32, #tpu.memory_space<vmem>>) attributes {dimension_semantics = [#tpu.dimension_semantics<parallel>, #tpu.dimension_semantics<parallel>], iteration_bounds = array<i64: 2, 1>, scalar_prefetch = 0 : i64, scratch_operands = 1 : i64, tpu.core_type = #tpu.core_type<tc>, window_params = [{transform_indices = @transform_0, window_bounds = array<i64: 1, 1, 9, 9, 4>}, {transform_indices = @transform_1, window_bounds = array<i64: 1, 1, 9, 9, 4>}, {transform_indices = @transform_2, window_bounds = array<i64: 1, 1, 9, 9, 4>}, {transform_indices = @transform_3, window_bounds = array<i64: 1, 1, 9, 9, 4>}, {pipeline_mode = #tpu.pipeline_mode<synchronous>, transform_indices = @transform_4, window_bounds = array<i64: 9, 4, 16>}, {pipeline_mode = #tpu.pipeline_mode<synchronous>, transform_indices = @transform_5, window_bounds = array<i64: 1, 16>}, {transform_indices = @transform_6, window_bounds = array<i64: 1, 64, 16>}]} {
    %c0 = arith.constant 0 : index
    %c0_0 = arith.constant 0 : index
    %c0_1 = arith.constant 0 : index
    %c0_2 = arith.constant 0 : index
    %c0_3 = arith.constant 0 : index
    %0 = vector.load %arg2[%c0, %c0_0, %c0_1, %c0_2, %c0_3] : memref<1x1x9x9x4xbf16, #tpu.memory_space<vmem>>, vector<1x1x9x9x4xbf16>
    %1 = vector.shape_cast %0 : vector<1x1x9x9x4xbf16> to vector<9x9x4xbf16>
    %c0_4 = arith.constant 0 : index
    %c0_5 = arith.constant 0 : index
    %c0_6 = arith.constant 0 : index
    %c0_7 = arith.constant 0 : index
    %c0_8 = arith.constant 0 : index
    %2 = vector.load %arg3[%c0_4, %c0_5, %c0_6, %c0_7, %c0_8] : memref<1x1x9x9x4xbf16, #tpu.memory_space<vmem>>, vector<1x1x9x9x4xbf16>
    %3 = vector.shape_cast %2 : vector<1x1x9x9x4xbf16> to vector<9x9x4xbf16>
    %c0_9 = arith.constant 0 : index
    %c0_10 = arith.constant 0 : index
    %c0_11 = arith.constant 0 : index
    %c0_12 = arith.constant 0 : index
    %c0_13 = arith.constant 0 : index
    %4 = vector.load %arg4[%c0_9, %c0_10, %c0_11, %c0_12, %c0_13] : memref<1x1x9x9x4xbf16, #tpu.memory_space<vmem>>, vector<1x1x9x9x4xbf16>
    %5 = vector.shape_cast %4 : vector<1x1x9x9x4xbf16> to vector<9x9x4xbf16>
    %c0_14 = arith.constant 0 : index
    %c0_15 = arith.constant 0 : index
    %c0_16 = arith.constant 0 : index
    %c0_17 = arith.constant 0 : index
    %c0_18 = arith.constant 0 : index
    %6 = vector.load %arg5[%c0_14, %c0_15, %c0_16, %c0_17, %c0_18] : memref<1x1x9x9x4xbf16, #tpu.memory_space<vmem>>, vector<1x1x9x9x4xbf16>
    %7 = vector.shape_cast %6 : vector<1x1x9x9x4xbf16> to vector<9x9x4xbf16>
    %cst = arith.constant 0.000000e+00 : f32
    %8 = vector.broadcast %cst : f32 to vector<64x16xf32>
    %c0_19 = arith.constant 0 : index
    %c0_20 = arith.constant 0 : index
    %9 = vector.load %arg9[%c0_19, %c0_20] : memref<64x16xf32, #tpu.memory_space<vmem>>, vector<64x16xf32>
    tpu.vector_store %arg9[%c0_19, %c0_20], %8 {strides = array<i32>} : memref<64x16xf32, #tpu.memory_space<vmem>>, vector<64x16xf32>,
    %10 = vector.extract_strided_slice %1 {offsets = [0, 0, 0], sizes = [8, 8, 4], strides = [1, 1, 1]} : vector<9x9x4xbf16> to vector<8x8x4xbf16>
    %11 = vector.shape_cast %10 : vector<8x8x4xbf16> to vector<64x4xbf16>
    %c0_21 = arith.constant 0 : index
    %c0_22 = arith.constant 0 : index
    %12 = vector.load %arg9[%c0_21, %c0_22] : memref<64x16xf32, #tpu.memory_space<vmem>>, vector<64x16xf32>
    %c0_23 = arith.constant 0 : index
    %c0_24 = arith.constant 0 : index
    %c0_25 = arith.constant 0 : index
    %13 = vector.load %arg6[%c0_23, %c0_24, %c0_25] : memref<9x4x16xbf16, #tpu.memory_space<vmem>>, vector<1x4x16xbf16>
    %14 = vector.shape_cast %13 : vector<1x4x16xbf16> to vector<4x16xbf16>
    %cst_26 = arith.constant dense<0.000000e+00> : vector<64x16xf32>
    %15 = tpu.matmul %11, %14, %cst_26 {dimension_numbers = #tpu.dot_dimension_numbers<[1], [0], [0], [1], [0, 0, 1, 1], [], []>} : vector<64x4xbf16>, vector<4x16xbf16>, vector<64x16xf32> -> vector<64x16xf32>
    %16 = arith.addf %12, %15 : vector<64x16xf32>
    %c0_27 = arith.constant 0 : index
    %c0_28 = arith.constant 0 : index
    %17 = vector.load %arg9[%c0_27, %c0_28] : memref<64x16xf32, #tpu.memory_space<vmem>>, vector<64x16xf32>
    tpu.vector_store %arg9[%c0_27, %c0_28], %16 {strides = array<i32>} : memref<64x16xf32, #tpu.memory_space<vmem>>, vector<64x16xf32>,
    %18 = vector.extract_strided_slice %3 {offsets = [0, 0, 0], sizes = [8, 8, 4], strides = [1, 1, 1]} : vector<9x9x4xbf16> to vector<8x8x4xbf16>
    %19 = vector.shape_cast %18 : vector<8x8x4xbf16> to vector<64x4xbf16>
    %c0_29 = arith.constant 0 : index
    %c0_30 = arith.constant 0 : index
    %20 = vector.load %arg9[%c0_29, %c0_30] : memref<64x16xf32, #tpu.memory_space<vmem>>, vector<64x16xf32>
    %c1 = arith.constant 1 : index
    %c0_31 = arith.constant 0 : index
    %c0_32 = arith.constant 0 : index
    %21 = vector.load %arg6[%c1, %c0_31, %c0_32] : memref<9x4x16xbf16, #tpu.memory_space<vmem>>, vector<1x4x16xbf16>
    %22 = vector.shape_cast %21 : vector<1x4x16xbf16> to vector<4x16xbf16>
    %cst_33 = arith.constant dense<0.000000e+00> : vector<64x16xf32>
    %23 = tpu.matmul %19, %22, %cst_33 {dimension_numbers = #tpu.dot_dimension_numbers<[1], [0], [0], [1], [0, 0, 1, 1], [], []>} : vector<64x4xbf16>, vector<4x16xbf16>, vector<64x16xf32> -> vector<64x16xf32>
    %24 = arith.addf %20, %23 : vector<64x16xf32>
    %c0_34 = arith.constant 0 : index
    %c0_35 = arith.constant 0 : index
    %25 = vector.load %arg9[%c0_34, %c0_35] : memref<64x16xf32, #tpu.memory_space<vmem>>, vector<64x16xf32>
    tpu.vector_store %arg9[%c0_34, %c0_35], %24 {strides = array<i32>} : memref<64x16xf32, #tpu.memory_space<vmem>>, vector<64x16xf32>,
    %26 = vector.extract_strided_slice %1 {offsets = [0, 1, 0], sizes = [8, 8, 4], strides = [1, 1, 1]} : vector<9x9x4xbf16> to vector<8x8x4xbf16>
    %27 = vector.shape_cast %26 : vector<8x8x4xbf16> to vector<64x4xbf16>
    %c0_36 = arith.constant 0 : index
    %c0_37 = arith.constant 0 : index
    %28 = vector.load %arg9[%c0_36, %c0_37] : memref<64x16xf32, #tpu.memory_space<vmem>>, vector<64x16xf32>
    %c2 = arith.constant 2 : index
    %c0_38 = arith.constant 0 : index
    %c0_39 = arith.constant 0 : index
    %29 = vector.load %arg6[%c2, %c0_38, %c0_39] : memref<9x4x16xbf16, #tpu.memory_space<vmem>>, vector<1x4x16xbf16>
    %30 = vector.shape_cast %29 : vector<1x4x16xbf16> to vector<4x16xbf16>
    %cst_40 = arith.constant dense<0.000000e+00> : vector<64x16xf32>
    %31 = tpu.matmul %27, %30, %cst_40 {dimension_numbers = #tpu.dot_dimension_numbers<[1], [0], [0], [1], [0, 0, 1, 1], [], []>} : vector<64x4xbf16>, vector<4x16xbf16>, vector<64x16xf32> -> vector<64x16xf32>
    %32 = arith.addf %28, %31 : vector<64x16xf32>
    %c0_41 = arith.constant 0 : index
    %c0_42 = arith.constant 0 : index
    %33 = vector.load %arg9[%c0_41, %c0_42] : memref<64x16xf32, #tpu.memory_space<vmem>>, vector<64x16xf32>
    tpu.vector_store %arg9[%c0_41, %c0_42], %32 {strides = array<i32>} : memref<64x16xf32, #tpu.memory_space<vmem>>, vector<64x16xf32>,
    %34 = vector.extract_strided_slice %5 {offsets = [0, 0, 0], sizes = [8, 8, 4], strides = [1, 1, 1]} : vector<9x9x4xbf16> to vector<8x8x4xbf16>
    %35 = vector.shape_cast %34 : vector<8x8x4xbf16> to vector<64x4xbf16>
    %c0_43 = arith.constant 0 : index
    %c0_44 = arith.constant 0 : index
    %36 = vector.load %arg9[%c0_43, %c0_44] : memref<64x16xf32, #tpu.memory_space<vmem>>, vector<64x16xf32>
    %c3 = arith.constant 3 : index
    %c0_45 = arith.constant 0 : index
    %c0_46 = arith.constant 0 : index
    %37 = vector.load %arg6[%c3, %c0_45, %c0_46] : memref<9x4x16xbf16, #tpu.memory_space<vmem>>, vector<1x4x16xbf16>
    %38 = vector.shape_cast %37 : vector<1x4x16xbf16> to vector<4x16xbf16>
    %cst_47 = arith.constant dense<0.000000e+00> : vector<64x16xf32>
    %39 = tpu.matmul %35, %38, %cst_47 {dimension_numbers = #tpu.dot_dimension_numbers<[1], [0], [0], [1], [0, 0, 1, 1], [], []>} : vector<64x4xbf16>, vector<4x16xbf16>, vector<64x16xf32> -> vector<64x16xf32>
    %40 = arith.addf %36, %39 : vector<64x16xf32>
    %c0_48 = arith.constant 0 : index
    %c0_49 = arith.constant 0 : index
    %41 = vector.load %arg9[%c0_48, %c0_49] : memref<64x16xf32, #tpu.memory_space<vmem>>, vector<64x16xf32>
    tpu.vector_store %arg9[%c0_48, %c0_49], %40 {strides = array<i32>} : memref<64x16xf32, #tpu.memory_space<vmem>>, vector<64x16xf32>,
    %42 = vector.extract_strided_slice %7 {offsets = [0, 0, 0], sizes = [8, 8, 4], strides = [1, 1, 1]} : vector<9x9x4xbf16> to vector<8x8x4xbf16>
    %43 = vector.shape_cast %42 : vector<8x8x4xbf16> to vector<64x4xbf16>
    %c0_50 = arith.constant 0 : index
    %c0_51 = arith.constant 0 : index
    %44 = vector.load %arg9[%c0_50, %c0_51] : memref<64x16xf32, #tpu.memory_space<vmem>>, vector<64x16xf32>
    %c4 = arith.constant 4 : index
    %c0_52 = arith.constant 0 : index
    %c0_53 = arith.constant 0 : index
    %45 = vector.load %arg6[%c4, %c0_52, %c0_53] : memref<9x4x16xbf16, #tpu.memory_space<vmem>>, vector<1x4x16xbf16>
    %46 = vector.shape_cast %45 : vector<1x4x16xbf16> to vector<4x16xbf16>
    %cst_54 = arith.constant dense<0.000000e+00> : vector<64x16xf32>
    %47 = tpu.matmul %43, %46, %cst_54 {dimension_numbers = #tpu.dot_dimension_numbers<[1], [0], [0], [1], [0, 0, 1, 1], [], []>} : vector<64x4xbf16>, vector<4x16xbf16>, vector<64x16xf32> -> vector<64x16xf32>
    %48 = arith.addf %44, %47 : vector<64x16xf32>
    %c0_55 = arith.constant 0 : index
    %c0_56 = arith.constant 0 : index
    %49 = vector.load %arg9[%c0_55, %c0_56] : memref<64x16xf32, #tpu.memory_space<vmem>>, vector<64x16xf32>
    tpu.vector_store %arg9[%c0_55, %c0_56], %48 {strides = array<i32>} : memref<64x16xf32, #tpu.memory_space<vmem>>, vector<64x16xf32>,
    %50 = vector.extract_strided_slice %5 {offsets = [0, 1, 0], sizes = [8, 8, 4], strides = [1, 1, 1]} : vector<9x9x4xbf16> to vector<8x8x4xbf16>
    %51 = vector.shape_cast %50 : vector<8x8x4xbf16> to vector<64x4xbf16>
    %c0_57 = arith.constant 0 : index
    %c0_58 = arith.constant 0 : index
    %52 = vector.load %arg9[%c0_57, %c0_58] : memref<64x16xf32, #tpu.memory_space<vmem>>, vector<64x16xf32>
    %c5 = arith.constant 5 : index
    %c0_59 = arith.constant 0 : index
    %c0_60 = arith.constant 0 : index
    %53 = vector.load %arg6[%c5, %c0_59, %c0_60] : memref<9x4x16xbf16, #tpu.memory_space<vmem>>, vector<1x4x16xbf16>
    %54 = vector.shape_cast %53 : vector<1x4x16xbf16> to vector<4x16xbf16>
    %cst_61 = arith.constant dense<0.000000e+00> : vector<64x16xf32>
    %55 = tpu.matmul %51, %54, %cst_61 {dimension_numbers = #tpu.dot_dimension_numbers<[1], [0], [0], [1], [0, 0, 1, 1], [], []>} : vector<64x4xbf16>, vector<4x16xbf16>, vector<64x16xf32> -> vector<64x16xf32>
    %56 = arith.addf %52, %55 : vector<64x16xf32>
    %c0_62 = arith.constant 0 : index
    %c0_63 = arith.constant 0 : index
    %57 = vector.load %arg9[%c0_62, %c0_63] : memref<64x16xf32, #tpu.memory_space<vmem>>, vector<64x16xf32>
    tpu.vector_store %arg9[%c0_62, %c0_63], %56 {strides = array<i32>} : memref<64x16xf32, #tpu.memory_space<vmem>>, vector<64x16xf32>,
    %58 = vector.extract_strided_slice %1 {offsets = [1, 0, 0], sizes = [8, 8, 4], strides = [1, 1, 1]} : vector<9x9x4xbf16> to vector<8x8x4xbf16>
    %59 = vector.shape_cast %58 : vector<8x8x4xbf16> to vector<64x4xbf16>
    %c0_64 = arith.constant 0 : index
    %c0_65 = arith.constant 0 : index
    %60 = vector.load %arg9[%c0_64, %c0_65] : memref<64x16xf32, #tpu.memory_space<vmem>>, vector<64x16xf32>
    %c6 = arith.constant 6 : index
    %c0_66 = arith.constant 0 : index
    %c0_67 = arith.constant 0 : index
    %61 = vector.load %arg6[%c6, %c0_66, %c0_67] : memref<9x4x16xbf16, #tpu.memory_space<vmem>>, vector<1x4x16xbf16>
    %62 = vector.shape_cast %61 : vector<1x4x16xbf16> to vector<4x16xbf16>
    %cst_68 = arith.constant dense<0.000000e+00> : vector<64x16xf32>
    %63 = tpu.matmul %59, %62, %cst_68 {dimension_numbers = #tpu.dot_dimension_numbers<[1], [0], [0], [1], [0, 0, 1, 1], [], []>} : vector<64x4xbf16>, vector<4x16xbf16>, vector<64x16xf32> -> vector<64x16xf32>
    %64 = arith.addf %60, %63 : vector<64x16xf32>
    %c0_69 = arith.constant 0 : index
    %c0_70 = arith.constant 0 : index
    %65 = vector.load %arg9[%c0_69, %c0_70] : memref<64x16xf32, #tpu.memory_space<vmem>>, vector<64x16xf32>
    tpu.vector_store %arg9[%c0_69, %c0_70], %64 {strides = array<i32>} : memref<64x16xf32, #tpu.memory_space<vmem>>, vector<64x16xf32>,
    %66 = vector.extract_strided_slice %3 {offsets = [1, 0, 0], sizes = [8, 8, 4], strides = [1, 1, 1]} : vector<9x9x4xbf16> to vector<8x8x4xbf16>
    %67 = vector.shape_cast %66 : vector<8x8x4xbf16> to vector<64x4xbf16>
    %c0_71 = arith.constant 0 : index
    %c0_72 = arith.constant 0 : index
    %68 = vector.load %arg9[%c0_71, %c0_72] : memref<64x16xf32, #tpu.memory_space<vmem>>, vector<64x16xf32>
    %c7 = arith.constant 7 : index
    %c0_73 = arith.constant 0 : index
    %c0_74 = arith.constant 0 : index
    %69 = vector.load %arg6[%c7, %c0_73, %c0_74] : memref<9x4x16xbf16, #tpu.memory_space<vmem>>, vector<1x4x16xbf16>
    %70 = vector.shape_cast %69 : vector<1x4x16xbf16> to vector<4x16xbf16>
    %cst_75 = arith.constant dense<0.000000e+00> : vector<64x16xf32>
    %71 = tpu.matmul %67, %70, %cst_75 {dimension_numbers = #tpu.dot_dimension_numbers<[1], [0], [0], [1], [0, 0, 1, 1], [], []>} : vector<64x4xbf16>, vector<4x16xbf16>, vector<64x16xf32> -> vector<64x16xf32>
    %72 = arith.addf %68, %71 : vector<64x16xf32>
    %c0_76 = arith.constant 0 : index
    %c0_77 = arith.constant 0 : index
    %73 = vector.load %arg9[%c0_76, %c0_77] : memref<64x16xf32, #tpu.memory_space<vmem>>, vector<64x16xf32>
    tpu.vector_store %arg9[%c0_76, %c0_77], %72 {strides = array<i32>} : memref<64x16xf32, #tpu.memory_space<vmem>>, vector<64x16xf32>,
    %74 = vector.extract_strided_slice %1 {offsets = [1, 1, 0], sizes = [8, 8, 4], strides = [1, 1, 1]} : vector<9x9x4xbf16> to vector<8x8x4xbf16>
    %75 = vector.shape_cast %74 : vector<8x8x4xbf16> to vector<64x4xbf16>
    %c0_78 = arith.constant 0 : index
    %c0_79 = arith.constant 0 : index
    %76 = vector.load %arg9[%c0_78, %c0_79] : memref<64x16xf32, #tpu.memory_space<vmem>>, vector<64x16xf32>
    %c8 = arith.constant 8 : index
    %c0_80 = arith.constant 0 : index
    %c0_81 = arith.constant 0 : index
    %77 = vector.load %arg6[%c8, %c0_80, %c0_81] : memref<9x4x16xbf16, #tpu.memory_space<vmem>>, vector<1x4x16xbf16>
    %78 = vector.shape_cast %77 : vector<1x4x16xbf16> to vector<4x16xbf16>
    %cst_82 = arith.constant dense<0.000000e+00> : vector<64x16xf32>
    %79 = tpu.matmul %75, %78, %cst_82 {dimension_numbers = #tpu.dot_dimension_numbers<[1], [0], [0], [1], [0, 0, 1, 1], [], []>} : vector<64x4xbf16>, vector<4x16xbf16>, vector<64x16xf32> -> vector<64x16xf32>
    %80 = arith.addf %76, %79 : vector<64x16xf32>
    %c0_83 = arith.constant 0 : index
    %c0_84 = arith.constant 0 : index
    %81 = vector.load %arg9[%c0_83, %c0_84] : memref<64x16xf32, #tpu.memory_space<vmem>>, vector<64x16xf32>
    tpu.vector_store %arg9[%c0_83, %c0_84], %80 {strides = array<i32>} : memref<64x16xf32, #tpu.memory_space<vmem>>, vector<64x16xf32>,
    %c0_85 = arith.constant 0 : index
    %c0_86 = arith.constant 0 : index
    %82 = vector.load %arg9[%c0_85, %c0_86] : memref<64x16xf32, #tpu.memory_space<vmem>>, vector<64x16xf32>
    %c0_87 = arith.constant 0 : index
    %c0_88 = arith.constant 0 : index
    %83 = vector.load %arg7[%c0_87, %c0_88] : memref<1x16xf32, #tpu.memory_space<vmem>>, vector<1x16xf32>
    %84 = vector.broadcast %83 : vector<1x16xf32> to vector<64x16xf32>
    %85 = arith.addf %82, %84 : vector<64x16xf32>
    %cst_89 = arith.constant 0.000000e+00 : f32
    %86 = vector.broadcast %cst_89 : f32 to vector<64x16xf32>
    %87 = arith.maximumf %85, %86 : vector<64x16xf32>
    %88 = arith.truncf %87 : vector<64x16xf32> to vector<64x16xbf16>
    %c0_90 = arith.constant 0 : index
    %c0_91 = arith.constant 0 : index
    %c0_92 = arith.constant 0 : index
    %89 = vector.load %arg8[%c0_90, %c0_91, %c0_92] : memref<1x64x16xbf16, #tpu.memory_space<vmem>>, vector<1x64x16xbf16>
    %90 = vector.shape_cast %89 : vector<1x64x16xbf16> to vector<64x16xbf16>
    %91 = vector.shape_cast %88 : vector<64x16xbf16> to vector<1x64x16xbf16>
    tpu.vector_store %arg8[%c0_90, %c0_91, %c0_92], %91 {strides = array<i32>} : memref<1x64x16xbf16, #tpu.memory_space<vmem>>, vector<1x64x16xbf16>,
    return
  }
  func.func @transform_0(%arg0: i32, %arg1: i32) -> (i32, i32, i32, i32, i32) {
    %c0_i32 = arith.constant 0 : i32
    %c0_i32_0 = arith.constant 0 : i32
    %c0_i32_1 = arith.constant 0 : i32
    %c0_i32_2 = arith.constant 0 : i32
    return %arg0, %arg1, %c0_i32, %c0_i32_0, %c0_i32_1 : i32, i32, i32, i32, i32
  }
  func.func @transform_1(%arg0: i32, %arg1: i32) -> (i32, i32, i32, i32, i32) {
    %c0_i32 = arith.constant 0 : i32
    %c0_i32_0 = arith.constant 0 : i32
    %c0_i32_1 = arith.constant 0 : i32
    %c0_i32_2 = arith.constant 0 : i32
    return %arg0, %arg1, %c0_i32, %c0_i32_0, %c0_i32_1 : i32, i32, i32, i32, i32
  }
  func.func @transform_2(%arg0: i32, %arg1: i32) -> (i32, i32, i32, i32, i32) {
    %c0_i32 = arith.constant 0 : i32
    %c0_i32_0 = arith.constant 0 : i32
    %c0_i32_1 = arith.constant 0 : i32
    %c0_i32_2 = arith.constant 0 : i32
    return %arg0, %arg1, %c0_i32, %c0_i32_0, %c0_i32_1 : i32, i32, i32, i32, i32
  }
  func.func @transform_3(%arg0: i32, %arg1: i32) -> (i32, i32, i32, i32, i32) {
    %c0_i32 = arith.constant 0 : i32
    %c0_i32_0 = arith.constant 0 : i32
    %c0_i32_1 = arith.constant 0 : i32
    %c0_i32_2 = arith.constant 0 : i32
    return %arg0, %arg1, %c0_i32, %c0_i32_0, %c0_i32_1 : i32, i32, i32, i32, i32
  }
  func.func @transform_4(%arg0: i32, %arg1: i32) -> (i32, i32, i32) {
    %c0_i32 = arith.constant 0 : i32
    %c0_i32_0 = arith.constant 0 : i32
    %c0_i32_1 = arith.constant 0 : i32
    %c0_i32_2 = arith.constant 0 : i32
    return %c0_i32, %c0_i32_0, %c0_i32_1 : i32, i32, i32
  }
  func.func @transform_5(%arg0: i32, %arg1: i32) -> (i32, i32) {
    %c0_i32 = arith.constant 0 : i32
    %c0_i32_0 = arith.constant 0 : i32
    %c0_i32_1 = arith.constant 0 : i32
    return %c0_i32, %c0_i32_0 : i32, i32
  }
  func.func @transform_6(%arg0: i32, %arg1: i32) -> (i32, i32, i32) {
    %c0_i32 = arith.constant 0 : i32
    %c0_i32_0 = arith.constant 0 : i32
    return %arg0, %arg1, %c0_i32 : i32, i32, i32
  }
}

module attributes {stable_mosaic.version = 11 : i64} {
  func.func @_conv3x3_s2_kernel(%arg0: i32, %arg1: i32, %arg2: memref<1x1x5x9x16xbf16, #tpu.memory_space<vmem>>, %arg3: memref<1x1x5x9x16xbf16, #tpu.memory_space<vmem>>, %arg4: memref<1x1x5x9x16xbf16, #tpu.memory_space<vmem>>, %arg5: memref<1x1x5x9x16xbf16, #tpu.memory_space<vmem>>, %arg6: memref<9x16x32xbf16, #tpu.memory_space<vmem>>, %arg7: memref<1x32xf32, #tpu.memory_space<vmem>>, %arg8: memref<1x32x32xbf16, #tpu.memory_space<vmem>>, %arg9: memref<32x32xf32, #tpu.memory_space<vmem>>) attributes {dimension_semantics = [#tpu.dimension_semantics<parallel>, #tpu.dimension_semantics<parallel>], iteration_bounds = array<i64: 2, 1>, scalar_prefetch = 0 : i64, scratch_operands = 1 : i64, tpu.core_type = #tpu.core_type<tc>, window_params = [{transform_indices = @transform_0, window_bounds = array<i64: 1, 1, 5, 9, 16>}, {transform_indices = @transform_1, window_bounds = array<i64: 1, 1, 5, 9, 16>}, {transform_indices = @transform_2, window_bounds = array<i64: 1, 1, 5, 9, 16>}, {transform_indices = @transform_3, window_bounds = array<i64: 1, 1, 5, 9, 16>}, {pipeline_mode = #tpu.pipeline_mode<synchronous>, transform_indices = @transform_4, window_bounds = array<i64: 9, 16, 32>}, {pipeline_mode = #tpu.pipeline_mode<synchronous>, transform_indices = @transform_5, window_bounds = array<i64: 1, 32>}, {transform_indices = @transform_6, window_bounds = array<i64: 1, 32, 32>}]} {
    %c0 = arith.constant 0 : index
    %c0_0 = arith.constant 0 : index
    %c0_1 = arith.constant 0 : index
    %c0_2 = arith.constant 0 : index
    %c0_3 = arith.constant 0 : index
    %0 = vector.load %arg2[%c0, %c0_0, %c0_1, %c0_2, %c0_3] : memref<1x1x5x9x16xbf16, #tpu.memory_space<vmem>>, vector<1x1x5x9x16xbf16>
    %1 = vector.shape_cast %0 : vector<1x1x5x9x16xbf16> to vector<5x9x16xbf16>
    %c0_4 = arith.constant 0 : index
    %c0_5 = arith.constant 0 : index
    %c0_6 = arith.constant 0 : index
    %c0_7 = arith.constant 0 : index
    %c0_8 = arith.constant 0 : index
    %2 = vector.load %arg3[%c0_4, %c0_5, %c0_6, %c0_7, %c0_8] : memref<1x1x5x9x16xbf16, #tpu.memory_space<vmem>>, vector<1x1x5x9x16xbf16>
    %3 = vector.shape_cast %2 : vector<1x1x5x9x16xbf16> to vector<5x9x16xbf16>
    %c0_9 = arith.constant 0 : index
    %c0_10 = arith.constant 0 : index
    %c0_11 = arith.constant 0 : index
    %c0_12 = arith.constant 0 : index
    %c0_13 = arith.constant 0 : index
    %4 = vector.load %arg4[%c0_9, %c0_10, %c0_11, %c0_12, %c0_13] : memref<1x1x5x9x16xbf16, #tpu.memory_space<vmem>>, vector<1x1x5x9x16xbf16>
    %5 = vector.shape_cast %4 : vector<1x1x5x9x16xbf16> to vector<5x9x16xbf16>
    %c0_14 = arith.constant 0 : index
    %c0_15 = arith.constant 0 : index
    %c0_16 = arith.constant 0 : index
    %c0_17 = arith.constant 0 : index
    %c0_18 = arith.constant 0 : index
    %6 = vector.load %arg5[%c0_14, %c0_15, %c0_16, %c0_17, %c0_18] : memref<1x1x5x9x16xbf16, #tpu.memory_space<vmem>>, vector<1x1x5x9x16xbf16>
    %7 = vector.shape_cast %6 : vector<1x1x5x9x16xbf16> to vector<5x9x16xbf16>
    %cst = arith.constant 0.000000e+00 : f32
    %8 = vector.broadcast %cst : f32 to vector<32x32xf32>
    %c0_19 = arith.constant 0 : index
    %c0_20 = arith.constant 0 : index
    %9 = vector.load %arg9[%c0_19, %c0_20] : memref<32x32xf32, #tpu.memory_space<vmem>>, vector<32x32xf32>
    tpu.vector_store %arg9[%c0_19, %c0_20], %8 {strides = array<i32>} : memref<32x32xf32, #tpu.memory_space<vmem>>, vector<32x32xf32>,
    %10 = vector.extract_strided_slice %1 {offsets = [0, 0, 0], sizes = [4, 8, 16], strides = [1, 1, 1]} : vector<5x9x16xbf16> to vector<4x8x16xbf16>
    %11 = vector.shape_cast %10 : vector<4x8x16xbf16> to vector<32x16xbf16>
    %c0_21 = arith.constant 0 : index
    %c0_22 = arith.constant 0 : index
    %12 = vector.load %arg9[%c0_21, %c0_22] : memref<32x32xf32, #tpu.memory_space<vmem>>, vector<32x32xf32>
    %c0_23 = arith.constant 0 : index
    %c0_24 = arith.constant 0 : index
    %c0_25 = arith.constant 0 : index
    %13 = vector.load %arg6[%c0_23, %c0_24, %c0_25] : memref<9x16x32xbf16, #tpu.memory_space<vmem>>, vector<1x16x32xbf16>
    %14 = vector.shape_cast %13 : vector<1x16x32xbf16> to vector<16x32xbf16>
    %cst_26 = arith.constant dense<0.000000e+00> : vector<32x32xf32>
    %15 = tpu.matmul %11, %14, %cst_26 {dimension_numbers = #tpu.dot_dimension_numbers<[1], [0], [0], [1], [0, 0, 1, 1], [], []>} : vector<32x16xbf16>, vector<16x32xbf16>, vector<32x32xf32> -> vector<32x32xf32>
    %16 = arith.addf %12, %15 : vector<32x32xf32>
    %c0_27 = arith.constant 0 : index
    %c0_28 = arith.constant 0 : index
    %17 = vector.load %arg9[%c0_27, %c0_28] : memref<32x32xf32, #tpu.memory_space<vmem>>, vector<32x32xf32>
    tpu.vector_store %arg9[%c0_27, %c0_28], %16 {strides = array<i32>} : memref<32x32xf32, #tpu.memory_space<vmem>>, vector<32x32xf32>,
    %18 = vector.extract_strided_slice %3 {offsets = [0, 0, 0], sizes = [4, 8, 16], strides = [1, 1, 1]} : vector<5x9x16xbf16> to vector<4x8x16xbf16>
    %19 = vector.shape_cast %18 : vector<4x8x16xbf16> to vector<32x16xbf16>
    %c0_29 = arith.constant 0 : index
    %c0_30 = arith.constant 0 : index
    %20 = vector.load %arg9[%c0_29, %c0_30] : memref<32x32xf32, #tpu.memory_space<vmem>>, vector<32x32xf32>
    %c1 = arith.constant 1 : index
    %c0_31 = arith.constant 0 : index
    %c0_32 = arith.constant 0 : index
    %21 = vector.load %arg6[%c1, %c0_31, %c0_32] : memref<9x16x32xbf16, #tpu.memory_space<vmem>>, vector<1x16x32xbf16>
    %22 = vector.shape_cast %21 : vector<1x16x32xbf16> to vector<16x32xbf16>
    %cst_33 = arith.constant dense<0.000000e+00> : vector<32x32xf32>
    %23 = tpu.matmul %19, %22, %cst_33 {dimension_numbers = #tpu.dot_dimension_numbers<[1], [0], [0], [1], [0, 0, 1, 1], [], []>} : vector<32x16xbf16>, vector<16x32xbf16>, vector<32x32xf32> -> vector<32x32xf32>
    %24 = arith.addf %20, %23 : vector<32x32xf32>
    %c0_34 = arith.constant 0 : index
    %c0_35 = arith.constant 0 : index
    %25 = vector.load %arg9[%c0_34, %c0_35] : memref<32x32xf32, #tpu.memory_space<vmem>>, vector<32x32xf32>
    tpu.vector_store %arg9[%c0_34, %c0_35], %24 {strides = array<i32>} : memref<32x32xf32, #tpu.memory_space<vmem>>, vector<32x32xf32>,
    %26 = vector.extract_strided_slice %1 {offsets = [0, 1, 0], sizes = [4, 8, 16], strides = [1, 1, 1]} : vector<5x9x16xbf16> to vector<4x8x16xbf16>
    %27 = vector.shape_cast %26 : vector<4x8x16xbf16> to vector<32x16xbf16>
    %c0_36 = arith.constant 0 : index
    %c0_37 = arith.constant 0 : index
    %28 = vector.load %arg9[%c0_36, %c0_37] : memref<32x32xf32, #tpu.memory_space<vmem>>, vector<32x32xf32>
    %c2 = arith.constant 2 : index
    %c0_38 = arith.constant 0 : index
    %c0_39 = arith.constant 0 : index
    %29 = vector.load %arg6[%c2, %c0_38, %c0_39] : memref<9x16x32xbf16, #tpu.memory_space<vmem>>, vector<1x16x32xbf16>
    %30 = vector.shape_cast %29 : vector<1x16x32xbf16> to vector<16x32xbf16>
    %cst_40 = arith.constant dense<0.000000e+00> : vector<32x32xf32>
    %31 = tpu.matmul %27, %30, %cst_40 {dimension_numbers = #tpu.dot_dimension_numbers<[1], [0], [0], [1], [0, 0, 1, 1], [], []>} : vector<32x16xbf16>, vector<16x32xbf16>, vector<32x32xf32> -> vector<32x32xf32>
    %32 = arith.addf %28, %31 : vector<32x32xf32>
    %c0_41 = arith.constant 0 : index
    %c0_42 = arith.constant 0 : index
    %33 = vector.load %arg9[%c0_41, %c0_42] : memref<32x32xf32, #tpu.memory_space<vmem>>, vector<32x32xf32>
    tpu.vector_store %arg9[%c0_41, %c0_42], %32 {strides = array<i32>} : memref<32x32xf32, #tpu.memory_space<vmem>>, vector<32x32xf32>,
    %34 = vector.extract_strided_slice %5 {offsets = [0, 0, 0], sizes = [4, 8, 16], strides = [1, 1, 1]} : vector<5x9x16xbf16> to vector<4x8x16xbf16>
    %35 = vector.shape_cast %34 : vector<4x8x16xbf16> to vector<32x16xbf16>
    %c0_43 = arith.constant 0 : index
    %c0_44 = arith.constant 0 : index
    %36 = vector.load %arg9[%c0_43, %c0_44] : memref<32x32xf32, #tpu.memory_space<vmem>>, vector<32x32xf32>
    %c3 = arith.constant 3 : index
    %c0_45 = arith.constant 0 : index
    %c0_46 = arith.constant 0 : index
    %37 = vector.load %arg6[%c3, %c0_45, %c0_46] : memref<9x16x32xbf16, #tpu.memory_space<vmem>>, vector<1x16x32xbf16>
    %38 = vector.shape_cast %37 : vector<1x16x32xbf16> to vector<16x32xbf16>
    %cst_47 = arith.constant dense<0.000000e+00> : vector<32x32xf32>
    %39 = tpu.matmul %35, %38, %cst_47 {dimension_numbers = #tpu.dot_dimension_numbers<[1], [0], [0], [1], [0, 0, 1, 1], [], []>} : vector<32x16xbf16>, vector<16x32xbf16>, vector<32x32xf32> -> vector<32x32xf32>
    %40 = arith.addf %36, %39 : vector<32x32xf32>
    %c0_48 = arith.constant 0 : index
    %c0_49 = arith.constant 0 : index
    %41 = vector.load %arg9[%c0_48, %c0_49] : memref<32x32xf32, #tpu.memory_space<vmem>>, vector<32x32xf32>
    tpu.vector_store %arg9[%c0_48, %c0_49], %40 {strides = array<i32>} : memref<32x32xf32, #tpu.memory_space<vmem>>, vector<32x32xf32>,
    %42 = vector.extract_strided_slice %7 {offsets = [0, 0, 0], sizes = [4, 8, 16], strides = [1, 1, 1]} : vector<5x9x16xbf16> to vector<4x8x16xbf16>
    %43 = vector.shape_cast %42 : vector<4x8x16xbf16> to vector<32x16xbf16>
    %c0_50 = arith.constant 0 : index
    %c0_51 = arith.constant 0 : index
    %44 = vector.load %arg9[%c0_50, %c0_51] : memref<32x32xf32, #tpu.memory_space<vmem>>, vector<32x32xf32>
    %c4 = arith.constant 4 : index
    %c0_52 = arith.constant 0 : index
    %c0_53 = arith.constant 0 : index
    %45 = vector.load %arg6[%c4, %c0_52, %c0_53] : memref<9x16x32xbf16, #tpu.memory_space<vmem>>, vector<1x16x32xbf16>
    %46 = vector.shape_cast %45 : vector<1x16x32xbf16> to vector<16x32xbf16>
    %cst_54 = arith.constant dense<0.000000e+00> : vector<32x32xf32>
    %47 = tpu.matmul %43, %46, %cst_54 {dimension_numbers = #tpu.dot_dimension_numbers<[1], [0], [0], [1], [0, 0, 1, 1], [], []>} : vector<32x16xbf16>, vector<16x32xbf16>, vector<32x32xf32> -> vector<32x32xf32>
    %48 = arith.addf %44, %47 : vector<32x32xf32>
    %c0_55 = arith.constant 0 : index
    %c0_56 = arith.constant 0 : index
    %49 = vector.load %arg9[%c0_55, %c0_56] : memref<32x32xf32, #tpu.memory_space<vmem>>, vector<32x32xf32>
    tpu.vector_store %arg9[%c0_55, %c0_56], %48 {strides = array<i32>} : memref<32x32xf32, #tpu.memory_space<vmem>>, vector<32x32xf32>,
    %50 = vector.extract_strided_slice %5 {offsets = [0, 1, 0], sizes = [4, 8, 16], strides = [1, 1, 1]} : vector<5x9x16xbf16> to vector<4x8x16xbf16>
    %51 = vector.shape_cast %50 : vector<4x8x16xbf16> to vector<32x16xbf16>
    %c0_57 = arith.constant 0 : index
    %c0_58 = arith.constant 0 : index
    %52 = vector.load %arg9[%c0_57, %c0_58] : memref<32x32xf32, #tpu.memory_space<vmem>>, vector<32x32xf32>
    %c5 = arith.constant 5 : index
    %c0_59 = arith.constant 0 : index
    %c0_60 = arith.constant 0 : index
    %53 = vector.load %arg6[%c5, %c0_59, %c0_60] : memref<9x16x32xbf16, #tpu.memory_space<vmem>>, vector<1x16x32xbf16>
    %54 = vector.shape_cast %53 : vector<1x16x32xbf16> to vector<16x32xbf16>
    %cst_61 = arith.constant dense<0.000000e+00> : vector<32x32xf32>
    %55 = tpu.matmul %51, %54, %cst_61 {dimension_numbers = #tpu.dot_dimension_numbers<[1], [0], [0], [1], [0, 0, 1, 1], [], []>} : vector<32x16xbf16>, vector<16x32xbf16>, vector<32x32xf32> -> vector<32x32xf32>
    %56 = arith.addf %52, %55 : vector<32x32xf32>
    %c0_62 = arith.constant 0 : index
    %c0_63 = arith.constant 0 : index
    %57 = vector.load %arg9[%c0_62, %c0_63] : memref<32x32xf32, #tpu.memory_space<vmem>>, vector<32x32xf32>
    tpu.vector_store %arg9[%c0_62, %c0_63], %56 {strides = array<i32>} : memref<32x32xf32, #tpu.memory_space<vmem>>, vector<32x32xf32>,
    %58 = vector.extract_strided_slice %1 {offsets = [1, 0, 0], sizes = [4, 8, 16], strides = [1, 1, 1]} : vector<5x9x16xbf16> to vector<4x8x16xbf16>
    %59 = vector.shape_cast %58 : vector<4x8x16xbf16> to vector<32x16xbf16>
    %c0_64 = arith.constant 0 : index
    %c0_65 = arith.constant 0 : index
    %60 = vector.load %arg9[%c0_64, %c0_65] : memref<32x32xf32, #tpu.memory_space<vmem>>, vector<32x32xf32>
    %c6 = arith.constant 6 : index
    %c0_66 = arith.constant 0 : index
    %c0_67 = arith.constant 0 : index
    %61 = vector.load %arg6[%c6, %c0_66, %c0_67] : memref<9x16x32xbf16, #tpu.memory_space<vmem>>, vector<1x16x32xbf16>
    %62 = vector.shape_cast %61 : vector<1x16x32xbf16> to vector<16x32xbf16>
    %cst_68 = arith.constant dense<0.000000e+00> : vector<32x32xf32>
    %63 = tpu.matmul %59, %62, %cst_68 {dimension_numbers = #tpu.dot_dimension_numbers<[1], [0], [0], [1], [0, 0, 1, 1], [], []>} : vector<32x16xbf16>, vector<16x32xbf16>, vector<32x32xf32> -> vector<32x32xf32>
    %64 = arith.addf %60, %63 : vector<32x32xf32>
    %c0_69 = arith.constant 0 : index
    %c0_70 = arith.constant 0 : index
    %65 = vector.load %arg9[%c0_69, %c0_70] : memref<32x32xf32, #tpu.memory_space<vmem>>, vector<32x32xf32>
    tpu.vector_store %arg9[%c0_69, %c0_70], %64 {strides = array<i32>} : memref<32x32xf32, #tpu.memory_space<vmem>>, vector<32x32xf32>,
    %66 = vector.extract_strided_slice %3 {offsets = [1, 0, 0], sizes = [4, 8, 16], strides = [1, 1, 1]} : vector<5x9x16xbf16> to vector<4x8x16xbf16>
    %67 = vector.shape_cast %66 : vector<4x8x16xbf16> to vector<32x16xbf16>
    %c0_71 = arith.constant 0 : index
    %c0_72 = arith.constant 0 : index
    %68 = vector.load %arg9[%c0_71, %c0_72] : memref<32x32xf32, #tpu.memory_space<vmem>>, vector<32x32xf32>
    %c7 = arith.constant 7 : index
    %c0_73 = arith.constant 0 : index
    %c0_74 = arith.constant 0 : index
    %69 = vector.load %arg6[%c7, %c0_73, %c0_74] : memref<9x16x32xbf16, #tpu.memory_space<vmem>>, vector<1x16x32xbf16>
    %70 = vector.shape_cast %69 : vector<1x16x32xbf16> to vector<16x32xbf16>
    %cst_75 = arith.constant dense<0.000000e+00> : vector<32x32xf32>
    %71 = tpu.matmul %67, %70, %cst_75 {dimension_numbers = #tpu.dot_dimension_numbers<[1], [0], [0], [1], [0, 0, 1, 1], [], []>} : vector<32x16xbf16>, vector<16x32xbf16>, vector<32x32xf32> -> vector<32x32xf32>
    %72 = arith.addf %68, %71 : vector<32x32xf32>
    %c0_76 = arith.constant 0 : index
    %c0_77 = arith.constant 0 : index
    %73 = vector.load %arg9[%c0_76, %c0_77] : memref<32x32xf32, #tpu.memory_space<vmem>>, vector<32x32xf32>
    tpu.vector_store %arg9[%c0_76, %c0_77], %72 {strides = array<i32>} : memref<32x32xf32, #tpu.memory_space<vmem>>, vector<32x32xf32>,
    %74 = vector.extract_strided_slice %1 {offsets = [1, 1, 0], sizes = [4, 8, 16], strides = [1, 1, 1]} : vector<5x9x16xbf16> to vector<4x8x16xbf16>
    %75 = vector.shape_cast %74 : vector<4x8x16xbf16> to vector<32x16xbf16>
    %c0_78 = arith.constant 0 : index
    %c0_79 = arith.constant 0 : index
    %76 = vector.load %arg9[%c0_78, %c0_79] : memref<32x32xf32, #tpu.memory_space<vmem>>, vector<32x32xf32>
    %c8 = arith.constant 8 : index
    %c0_80 = arith.constant 0 : index
    %c0_81 = arith.constant 0 : index
    %77 = vector.load %arg6[%c8, %c0_80, %c0_81] : memref<9x16x32xbf16, #tpu.memory_space<vmem>>, vector<1x16x32xbf16>
    %78 = vector.shape_cast %77 : vector<1x16x32xbf16> to vector<16x32xbf16>
    %cst_82 = arith.constant dense<0.000000e+00> : vector<32x32xf32>
    %79 = tpu.matmul %75, %78, %cst_82 {dimension_numbers = #tpu.dot_dimension_numbers<[1], [0], [0], [1], [0, 0, 1, 1], [], []>} : vector<32x16xbf16>, vector<16x32xbf16>, vector<32x32xf32> -> vector<32x32xf32>
    %80 = arith.addf %76, %79 : vector<32x32xf32>
    %c0_83 = arith.constant 0 : index
    %c0_84 = arith.constant 0 : index
    %81 = vector.load %arg9[%c0_83, %c0_84] : memref<32x32xf32, #tpu.memory_space<vmem>>, vector<32x32xf32>
    tpu.vector_store %arg9[%c0_83, %c0_84], %80 {strides = array<i32>} : memref<32x32xf32, #tpu.memory_space<vmem>>, vector<32x32xf32>,
    %c0_85 = arith.constant 0 : index
    %c0_86 = arith.constant 0 : index
    %82 = vector.load %arg9[%c0_85, %c0_86] : memref<32x32xf32, #tpu.memory_space<vmem>>, vector<32x32xf32>
    %c0_87 = arith.constant 0 : index
    %c0_88 = arith.constant 0 : index
    %83 = vector.load %arg7[%c0_87, %c0_88] : memref<1x32xf32, #tpu.memory_space<vmem>>, vector<1x32xf32>
    %84 = vector.broadcast %83 : vector<1x32xf32> to vector<32x32xf32>
    %85 = arith.addf %82, %84 : vector<32x32xf32>
    %cst_89 = arith.constant 0.000000e+00 : f32
    %86 = vector.broadcast %cst_89 : f32 to vector<32x32xf32>
    %87 = arith.maximumf %85, %86 : vector<32x32xf32>
    %88 = arith.truncf %87 : vector<32x32xf32> to vector<32x32xbf16>
    %c0_90 = arith.constant 0 : index
    %c0_91 = arith.constant 0 : index
    %c0_92 = arith.constant 0 : index
    %89 = vector.load %arg8[%c0_90, %c0_91, %c0_92] : memref<1x32x32xbf16, #tpu.memory_space<vmem>>, vector<1x32x32xbf16>
    %90 = vector.shape_cast %89 : vector<1x32x32xbf16> to vector<32x32xbf16>
    %91 = vector.shape_cast %88 : vector<32x32xbf16> to vector<1x32x32xbf16>
    tpu.vector_store %arg8[%c0_90, %c0_91, %c0_92], %91 {strides = array<i32>} : memref<1x32x32xbf16, #tpu.memory_space<vmem>>, vector<1x32x32xbf16>,
    return
  }
  func.func @transform_0(%arg0: i32, %arg1: i32) -> (i32, i32, i32, i32, i32) {
    %c0_i32 = arith.constant 0 : i32
    %c0_i32_0 = arith.constant 0 : i32
    %c0_i32_1 = arith.constant 0 : i32
    %c0_i32_2 = arith.constant 0 : i32
    return %arg0, %arg1, %c0_i32, %c0_i32_0, %c0_i32_1 : i32, i32, i32, i32, i32
  }
  func.func @transform_1(%arg0: i32, %arg1: i32) -> (i32, i32, i32, i32, i32) {
    %c0_i32 = arith.constant 0 : i32
    %c0_i32_0 = arith.constant 0 : i32
    %c0_i32_1 = arith.constant 0 : i32
    %c0_i32_2 = arith.constant 0 : i32
    return %arg0, %arg1, %c0_i32, %c0_i32_0, %c0_i32_1 : i32, i32, i32, i32, i32
  }
  func.func @transform_2(%arg0: i32, %arg1: i32) -> (i32, i32, i32, i32, i32) {
    %c0_i32 = arith.constant 0 : i32
    %c0_i32_0 = arith.constant 0 : i32
    %c0_i32_1 = arith.constant 0 : i32
    %c0_i32_2 = arith.constant 0 : i32
    return %arg0, %arg1, %c0_i32, %c0_i32_0, %c0_i32_1 : i32, i32, i32, i32, i32
  }
  func.func @transform_3(%arg0: i32, %arg1: i32) -> (i32, i32, i32, i32, i32) {
    %c0_i32 = arith.constant 0 : i32
    %c0_i32_0 = arith.constant 0 : i32
    %c0_i32_1 = arith.constant 0 : i32
    %c0_i32_2 = arith.constant 0 : i32
    return %arg0, %arg1, %c0_i32, %c0_i32_0, %c0_i32_1 : i32, i32, i32, i32, i32
  }
  func.func @transform_4(%arg0: i32, %arg1: i32) -> (i32, i32, i32) {
    %c0_i32 = arith.constant 0 : i32
    %c0_i32_0 = arith.constant 0 : i32
    %c0_i32_1 = arith.constant 0 : i32
    %c0_i32_2 = arith.constant 0 : i32
    return %c0_i32, %c0_i32_0, %c0_i32_1 : i32, i32, i32
  }
  func.func @transform_5(%arg0: i32, %arg1: i32) -> (i32, i32) {
    %c0_i32 = arith.constant 0 : i32
    %c0_i32_0 = arith.constant 0 : i32
    %c0_i32_1 = arith.constant 0 : i32
    return %c0_i32, %c0_i32_0 : i32, i32
  }
  func.func @transform_6(%arg0: i32, %arg1: i32) -> (i32, i32, i32) {
    %c0_i32 = arith.constant 0 : i32
    %c0_i32_0 = arith.constant 0 : i32
    return %arg0, %arg1, %c0_i32 : i32, i32, i32
  }
}

module attributes {stable_mosaic.version = 11 : i64} {
  func.func @_head_resize_kernel(%arg0: i32, %arg1: i32, %arg2: memref<1x4x128xbf16, #tpu.memory_space<vmem>>, %arg3: memref<16x4xf32, #tpu.memory_space<vmem>>, %arg4: memref<128x20xf32, #tpu.memory_space<vmem>>, %arg5: memref<20x80xf32, #tpu.memory_space<vmem>>, %arg6: memref<1x20xf32, #tpu.memory_space<vmem>>, %arg7: memref<1x16x80xf32, #tpu.memory_space<vmem>>) attributes {dimension_semantics = [#tpu.dimension_semantics<parallel>, #tpu.dimension_semantics<parallel>], iteration_bounds = array<i64: 2, 1>, scalar_prefetch = 0 : i64, scratch_operands = 0 : i64, tpu.core_type = #tpu.core_type<tc>, window_params = [{transform_indices = @transform_0, window_bounds = array<i64: 1, 4, 128>}, {transform_indices = @transform_1, window_bounds = array<i64: 16, 4>}, {pipeline_mode = #tpu.pipeline_mode<synchronous>, transform_indices = @transform_2, window_bounds = array<i64: 128, 20>}, {pipeline_mode = #tpu.pipeline_mode<synchronous>, transform_indices = @transform_3, window_bounds = array<i64: 20, 80>}, {pipeline_mode = #tpu.pipeline_mode<synchronous>, transform_indices = @transform_4, window_bounds = array<i64: 1, 20>}, {transform_indices = @transform_5, window_bounds = array<i64: 1, 16, 80>}]} {
    %c0 = arith.constant 0 : index
    %c0_0 = arith.constant 0 : index
    %c0_1 = arith.constant 0 : index
    %0 = vector.load %arg2[%c0, %c0_0, %c0_1] : memref<1x4x128xbf16, #tpu.memory_space<vmem>>, vector<1x4x128xbf16>
    %1 = vector.shape_cast %0 : vector<1x4x128xbf16> to vector<4x128xbf16>
    %2 = arith.extf %1 : vector<4x128xbf16> to vector<4x128xf32>
    %c0_2 = arith.constant 0 : index
    %c0_3 = arith.constant 0 : index
    %3 = vector.load %arg3[%c0_2, %c0_3] : memref<16x4xf32, #tpu.memory_space<vmem>>, vector<16x4xf32>
    %cst = arith.constant dense<0.000000e+00> : vector<16x128xf32>
    %4 = tpu.matmul %3, %2, %cst {dimension_numbers = #tpu.dot_dimension_numbers<[1], [0], [0], [1], [0, 0, 1, 1], [], []>} : vector<16x4xf32>, vector<4x128xf32>, vector<16x128xf32> -> vector<16x128xf32>
    %c0_4 = arith.constant 0 : index
    %c0_5 = arith.constant 0 : index
    %5 = vector.load %arg4[%c0_4, %c0_5] : memref<128x20xf32, #tpu.memory_space<vmem>>, vector<128x20xf32>
    %cst_6 = arith.constant dense<0.000000e+00> : vector<16x20xf32>
    %6 = tpu.matmul %4, %5, %cst_6 {dimension_numbers = #tpu.dot_dimension_numbers<[1], [0], [0], [1], [0, 0, 1, 1], [], []>} : vector<16x128xf32>, vector<128x20xf32>, vector<16x20xf32> -> vector<16x20xf32>
    %c0_7 = arith.constant 0 : index
    %c0_8 = arith.constant 0 : index
    %7 = vector.load %arg6[%c0_7, %c0_8] : memref<1x20xf32, #tpu.memory_space<vmem>>, vector<1x20xf32>
    %8 = vector.broadcast %7 : vector<1x20xf32> to vector<16x20xf32>
    %9 = arith.addf %6, %8 : vector<16x20xf32>
    %c0_9 = arith.constant 0 : index
    %c0_10 = arith.constant 0 : index
    %10 = vector.load %arg5[%c0_9, %c0_10] : memref<20x80xf32, #tpu.memory_space<vmem>>, vector<20x80xf32>
    %cst_11 = arith.constant dense<0.000000e+00> : vector<16x80xf32>
    %11 = tpu.matmul %9, %10, %cst_11 {dimension_numbers = #tpu.dot_dimension_numbers<[1], [0], [0], [1], [0, 0, 1, 1], [], []>} : vector<16x20xf32>, vector<20x80xf32>, vector<16x80xf32> -> vector<16x80xf32>
    %c0_12 = arith.constant 0 : index
    %c0_13 = arith.constant 0 : index
    %c0_14 = arith.constant 0 : index
    %12 = vector.load %arg7[%c0_12, %c0_13, %c0_14] : memref<1x16x80xf32, #tpu.memory_space<vmem>>, vector<1x16x80xf32>
    %13 = vector.shape_cast %12 : vector<1x16x80xf32> to vector<16x80xf32>
    %14 = vector.shape_cast %11 : vector<16x80xf32> to vector<1x16x80xf32>
    tpu.vector_store %arg7[%c0_12, %c0_13, %c0_14], %14 {strides = array<i32>} : memref<1x16x80xf32, #tpu.memory_space<vmem>>, vector<1x16x80xf32>,
    return
  }
  func.func @transform_0(%arg0: i32, %arg1: i32) -> (i32, i32, i32) {
    %c0_i32 = arith.constant 0 : i32
    %c0_i32_0 = arith.constant 0 : i32
    %c0_i32_1 = arith.constant 0 : i32
    return %arg0, %c0_i32, %c0_i32_0 : i32, i32, i32
  }
  func.func @transform_1(%arg0: i32, %arg1: i32) -> (i32, i32) {
    %c0_i32 = arith.constant 0 : i32
    %c0_i32_0 = arith.constant 0 : i32
    return %arg1, %c0_i32 : i32, i32
  }
  func.func @transform_2(%arg0: i32, %arg1: i32) -> (i32, i32) {
    %c0_i32 = arith.constant 0 : i32
    %c0_i32_0 = arith.constant 0 : i32
    %c0_i32_1 = arith.constant 0 : i32
    return %c0_i32, %c0_i32_0 : i32, i32
  }
  func.func @transform_3(%arg0: i32, %arg1: i32) -> (i32, i32) {
    %c0_i32 = arith.constant 0 : i32
    %c0_i32_0 = arith.constant 0 : i32
    %c0_i32_1 = arith.constant 0 : i32
    return %c0_i32, %c0_i32_0 : i32, i32
  }
  func.func @transform_4(%arg0: i32, %arg1: i32) -> (i32, i32) {
    %c0_i32 = arith.constant 0 : i32
    %c0_i32_0 = arith.constant 0 : i32
    %c0_i32_1 = arith.constant 0 : i32
    return %c0_i32, %c0_i32_0 : i32, i32
  }
  func.func @transform_5(%arg0: i32, %arg1: i32) -> (i32, i32, i32) {
    %c0_i32 = arith.constant 0 : i32
    %c0_i32_0 = arith.constant 0 : i32
    return %arg0, %arg1, %c0_i32 : i32, i32, i32
  }
}

</mosaic_0001>

<bundles_post_ra>
// kernel: forward.5
= control target key start
LH: loop header
LB: loop body
LE: loop exit
PB: predicated region body
PF: predicated region fallthrough
CT: control target
= control target key end

     0   :  { %s814_s18 = smov 0   ;;  %s816_s19 = smov 0   ;;  %s923_s0 = inlined_call_operand.vmem [shape: bf16[2,4,128], index: 0, kind: input, shape index: {}]   ;;  %s924_s1 = inlined_call_operand.vmem [shape: f32[16,4], index: 1, kind: input, shape index: {}]   ;;  %s925_s2 = inlined_call_operand.vmem [shape: f32[128,20], index: 2, kind: input, shape index: {}]   ;;  %s926_s3 = inlined_call_operand.vmem [shape: f32[20,80], index: 3, kind: input, shape index: {}]   ;;  %s927_s4 = inlined_call_operand.vmem [shape: f32[1,20], index: 4, kind: input, shape index: {}]   ;;  %s928_s5 = inlined_call_operand.vmem [shape: f32[2,16,80], index: 5, kind: output, shape index: {}]  }
   0x1   :  { %s818_s20 = smov 0  }
   0x2 LB: > { %s27_s21 = sadd.s32 1, %s778_s19  ;;  %p647_p0 = scmp.ge.s32.totalorder %s782_s20, 1  ;;  %s782_s20 = sphi %s818_s20, %s15_s20   ;;  %s778_s19 = sphi %s816_s19, %s930_s19   ;;  %s774_s18 = sphi %s814_s18, %s929_s18  }
   0x3   : > { %p29_p1 = scmp.ge.s32.totalorder %s27_s21, 2  ;;  %p211_p2 = scmp.lt.s32.totalorder %s782_s20, 3 }
   0x5   : > { %s932_s21 = smov (%p29_p1, %s27_s21), 0  ;;  %p212_p3 = pnand %p647_p0, %p211_p2 }
   0x6   : > { %p247_p4 = scmp.lt.s32.totalorder (!%p212_p3), %s774_s18, 1 }
   0x7   : > { %215 = sbr.rel (%p212_p3) target bundleno = 610 (0x262), region = 40 }
   0xc   : > { %v269_v0 = vld [vmem:[%s924_s1] sm:$0xff]  ;;  %vm271_vm0 = vcmask 31744   ;;  %v372_v1 = vld [vmem:[%s925_s2 + $0x78] sm:$0xff]  ;;  %v371_v2 = vld [vmem:[%s925_s2 + $0x70] sm:$0xff]  ;;  %s934_s18 = smov (!%p247_p4, %s774_s18), 1  ;;  %vm278_vm1 = vcmask 1043456  }
   0xd   : > { %689 = vmatprep.mubr.msk.f32.mxu0 %vm271_vm0, %v269_v0  ;;  %692 = vmatprep.subr.mxu1 %v372_v1  ;;  %v370_v3 = vld [vmem:[%s925_s2 + $0x68] sm:$0xff]  ;;  %s648_s30 = sshll.u32 %s934_s18, 1  ;;  %v369_v4 = vld [vmem:[%s925_s2 + $0x60] sm:$0xff]  ;;  %v368_v6 = vld [vmem:[%s925_s2 + $0x58] sm:$0xff]  ;;  %vm458_vm2 = vcmask 162816   ;;  %s660_s28 = sshll.u32 %s934_s18, 4 }
   0xe   : > { %693 = vmatpush3.msra.mxu1 %v372_v1  ;;  %s250_s10 = scalar_lea.vmem %s923_s0, %s648_s30  ;;  %v270_v8 = vld [vmem:[%s924_s1 + $0x8] sm:$0xff]  ;;  %v367_v9 = vld [vmem:[%s925_s2 + $0x50] sm:$0xff]  ;;  %v365_v11 = vld [vmem:[%s925_s2 + $0x40] sm:$0xff]  ;;  %s265_s6 = scalar_lea.vmem %s928_s5, %s660_s28  ;;  %vm543_vm3 = vcmask 654336  }
   0xf   : > { %694 = vmatprep.subr.mxu1 %v371_v2  ;;  %v267_v5 = vld [vmem:[%s250_s10] sm:$0x3]  ;;  %v366_v10 = vld [vmem:[%s925_s2 + $0x48] sm:$0xff]  ;;  %v364_v12 = vld [vmem:[%s925_s2 + $0x38] sm:$0xff] }
  0x10   : > { %695 = vmatpush3.msra.mxu1 %v371_v2  ;;  %v268_v7 = vunpack.c.l.bf16 %v267_v5  ;;  %v363_v13 = vld [vmem:[%s925_s2 + $0x30] sm:$0xff]  ;;  %v362_v14 = vld [vmem:[%s925_s2 + $0x28] sm:$0xff]  ;;  %v361_v15 = vld [vmem:[%s925_s2 + $0x20] sm:$0xff] }
  0x11   : > { %696 = vmatprep.subr.mxu1 %v370_v3  ;;  %v360_v16 = vld [vmem:[%s925_s2 + $0x18] sm:$0xff]  ;;  %v359_v17 = vld [vmem:[%s925_s2 + $0x10] sm:$0xff]  ;;  %v358_v18 = vld [vmem:[%s925_s2 + $0x8] sm:$0xff] }
  0x12   : > { %697 = vmatpush3.msra.mxu1 %v370_v3  ;;  %687 = vmatprep.subr.msk.mxu0 %vm278_vm1, %v268_v7  ;;  %v357_v19 = vld [vmem:[%s925_s2] sm:$0xff]  ;;  %v457_v22 = vld [vmem:[%s926_s3 + $0x10] sm:$0xf]  ;;  %v456_v23 = vld [vmem:[%s926_s3 + $0x8] sm:$0xff] }
  0x13   : > { %698 = vmatprep.subr.mxu1 %v369_v4  ;;  %688 = vmatpush3.msk.msra.mxu0 %vm278_vm1, %v268_v7  ;;  %v455_v24 = vld [vmem:[%s926_s3] sm:$0xff] }
  0x14   : > { %699 = vmatpush3.msra.mxu1 %v369_v4  ;;  %690 = vmatmul.mubr.msk.f32.vlgmr.msra.gmra.mxu0 %vm271_vm0, %v270_v8  ;;  %v654_v26 = vld [vmem:[%s927_s4] ss:$0 sm:$0xff] }
  0x15   : > { %700 = vmatprep.subr.mxu1 %v368_v6  ;;  %727 = vmatprep.subr.msk.mxu0 %vm278_vm1, %v457_v22 }
  0x16   : > { %701 = vmatpush3.msra.mxu1 %v368_v6  ;;  %728 = vmatpush3.msk.msra.mxu0 %vm278_vm1, %v457_v22 }
  0x17   : > { %702 = vmatprep.subr.mxu1 %v367_v9  ;;  %729 = vmatprep.subr.mxu0 %v456_v23 }
  0x18   : > { %703 = vmatpush3.msra.mxu1 %v367_v9  ;;  %730 = vmatpush3.msra.mxu0 %v456_v23 }
  0x19   : > { %704 = vmatprep.subr.mxu1 %v366_v10  ;;  %731 = vmatprep.subr.mxu0 %v455_v24 }
  0x1a   : > { %705 = vmatpush3.msra.mxu1 %v366_v10  ;;  %732 = vmatpush3.msra.mxu0 %v455_v24 }
  0x1b   : > { %706 = vmatprep.subr.mxu1 %v365_v11 }
  0x1c   : > { %707 = vmatpush3.msra.mxu1 %v365_v11 }
  0x1d   : > { %708 = vmatprep.subr.mxu1 %v364_v12 }
  0x1e   : > { %709 = vmatpush3.msra.mxu1 %v364_v12 }
  0x1f   : > { %710 = vmatprep.subr.mxu1 %v363_v13 }
  0x20   : > { %711 = vmatpush3.msra.mxu1 %v363_v13 }
  0x21   : > { %712 = vmatprep.subr.mxu1 %v362_v14 }
  0x22   : > { %713 = vmatpush3.msra.mxu1 %v362_v14 }
  0x23   : > { %714 = vmatprep.subr.mxu1 %v361_v15 }
  0x24   : > { %715 = vmatpush3.msra.mxu1 %v361_v15 }
  0x25   : > { %716 = vmatprep.subr.mxu1 %v360_v16 }
  0x26   : > { %717 = vmatpush3.msra.mxu1 %v360_v16 }
  0x27   : > { %718 = vmatprep.subr.mxu1 %v359_v17 }
  0x28   : > { %719 = vmatpush3.msra.mxu1 %v359_v17 }
  0x29   : > { %720 = vmatprep.subr.mxu1 %v358_v18 }
  0x2a   : > { %721 = vmatpush3.msra.mxu1 %v358_v18 }
  0x2b   : > { %722 = vmatprep.subr.mxu1 %v357_v19 }
  0x2c   : > { %723 = vmatpush3.msra.mxu1 %v357_v19 }
  0xd4   : > { %v691_v20 = vpop.f32.mrf.mxu0 }
  0xd6   : > { %v348_v21 = vpop.f32.mrf.mxu0 }
  0xd7   : > { %724 = vmatprep.mubr.f32.mxu1 %v348_v21 }
  0xd8   : > { %725 = vmatmul.mubr.f32.vlgmr.msra.gmra.mxu1 %v691_v20 }
 0x198   : > { %v726_v25 = vpop.f32.mrf.mxu1 }
 0x199   : > { %v452_v29 = vadd.f32 %v726_v25, %v654_v26 }
 0x19a   : > { %v446_v27 = vpop.f32.mrf.mxu1 }
 0x19b   : > { %v447_v28 = vadd.f32 %v654_v26, %v446_v27 }
 0x19d   : > { %733 = vmatprep.mubr.msk.f32.mxu0 %vm458_vm2, %v447_v28 }
 0x19e   : > { %734 = vmatmul.mubr.msk.f32.vlgmr.msra.gmra.mxu0 %vm458_vm2, %v452_v29 }
 0x25e   : > { %v735_v30 = vpop.f32.mrf.mxu0 }
 0x25f   : > { %545 = vst.msk [vmem:[%s265_s6 + $0x8] sm:$0xff] %vm543_vm3, %v735_v30 }
 0x260   : > { %v534_v31 = vpop.f32.mrf.mxu0 }
 0x261   : > { %544 = vst.msk [vmem:[%s265_s6] sm:$0xff] %vm543_vm3, %v534_v31 }
 0x262 PF: > { %s15_s20 = sadd.s32 1, %s782_s20   ;;  %s929_s18 = smov %s778_s19 }
 0x263   : > { %p12_p5 = scmp.ge.s32.totalorder %s15_s20, 4   ;;  %s930_s19 = smov %s932_s21 }
 0x265   :  { %14 = sbr.rel (!%p12_p5) target bundleno = 2 (0x2), region = 73 }

// kernel: forward.4
= control target key start
LH: loop header
LB: loop body
LE: loop exit
PB: predicated region body
PF: predicated region fallthrough
CT: control target
= control target key end

     0   :  { %s1765_s21 = smov 0   ;;  %s1767_s22 = smov 0   ;;  %s2016_s0 = inlined_call_operand.vmem [shape: bf16[2,1,5,9,16], index: 0, kind: input, shape index: {}]   ;;  %s2017_s1 = inlined_call_operand.vmem [shape: bf16[2,1,5,9,16], index: 1, kind: input, shape index: {}]   ;;  %s2018_s2 = inlined_call_operand.vmem [shape: bf16[2,1,5,9,16], index: 2, kind: input, shape index: {}]   ;;  %s2019_s3 = inlined_call_operand.vmem [shape: bf16[2,1,5,9,16], index: 3, kind: input, shape index: {}]   ;;  %s2020_s4 = inlined_call_operand.vmem [shape: bf16[9,16,32], index: 4, kind: input, shape index: {}]   ;;  %s2021_s5 = inlined_call_operand.vmem [shape: f32[1,32], index: 5, kind: input, shape index: {}]   ;;  %s2022_s6 = inlined_call_operand.vmem [shape: bf16[2,32,32], index: 6, kind: output, shape index: {}]  }
   0x1   :  { %s1769_s23 = smov 0  }
   0x2 LB: > { %s28_s24 = sadd.s32 1, %s1723_s22  ;;  %p1497_p0 = scmp.ge.s32.totalorder %s1727_s23, 1  ;;  %s1727_s23 = sphi %s1769_s23, %s16_s23   ;;  %s1723_s22 = sphi %s1767_s22, %s2026_s22   ;;  %s1719_s21 = sphi %s1765_s21, %s2025_s21  }
   0x3   : > { %p30_p1 = scmp.ge.s32.totalorder %s28_s24, 2  ;;  %p280_p2 = scmp.lt.s32.totalorder %s1727_s23, 3 }
   0x5   : > { %s2028_s24 = smov (%p30_p1, %s28_s24), 0  ;;  %p281_p3 = pnand %p1497_p0, %p280_p2 }
   0x6   : > { %p345_p4 = scmp.lt.s32.totalorder (!%p281_p3), %s1719_s21, 1 }
   0x7   : > { %284 = sbr.rel (%p281_p3) target bundleno = 316 (0x13c), region = 44 }
   0xc   : > { %v1684_v0 = vld [vmem:[%s2020_s4] sm:$0xff]   ;;  %v1687_v1 = vld [vmem:[%s2020_s4 + $0x8] sm:$0xff]   ;;  %s2030_s21 = smov (!%p345_p4, %s1719_s21), 1  ;;  %v1692_v2 = vld [vmem:[%s2020_s4 + $0x10] sm:$0xff]   ;;  %vm419_vm0 = vcmask 261120   ;;  %vm446_vm1 = vcmask 130048  }
   0xd   : > { %1604 = vmatprep.subr.bf16.mxu0 %v1684_v0  ;;  %1610 = vmatprep.subr.bf16.mxu1 %v1687_v1  ;;  %s1795_s7 = smul.u32 40, %s2030_s21  ;;  %v1800_v3 = vld [vmem:[%s2020_s4 + $0x18] sm:$0xff]   ;;  %vm596_vm2 = vsmask.f32 3328  ;;  %v1729_v4 = vmov 0.0   ;;  %v1840_v18 = vld [vmem:[%s2020_s4 + $0x20] sm:$0xff]  }
   0xe   : > { %1605 = vmatpush3.bf16.msra.mxu0 %v1684_v0  ;;  %1611 = vmatpush3.bf16.msra.mxu1 %v1687_v1  ;;  %422 = vst.msk [vmem:[#allocation2 + $0x10] sm:$0xff] %vm419_vm0, %v1729_v4  ;;  %420 = vst.msk [vmem:[#allocation2] sm:$0xff] %vm419_vm0, %v1729_v4  ;;  %vm597_vm3 = vsmask.f32 7440  ;;  %v1870_v38 = vld [vmem:[%s2020_s4 + $0x28] sm:$0xff]   ;;  %s1572_s14 = sshll.u32 %s2030_s21, 4 }
   0xf   : > { %1616 = vmatprep.subr.bf16.mxu0 %v1692_v2  ;;  %s1806_s12 = scalar_lea.vmem %s2016_s0, %s1795_s7  ;;  %s1812_s15 = scalar_lea.vmem %s2017_s1, %s1795_s7  ;;  %1622 = vmatprep.subr.bf16.mxu1 %v1800_v3  ;;  %421 = vst.msk [vmem:[#allocation2 + $0x8] sm:$0xff] %vm419_vm0, %v1729_v4  ;;  %423 = vst.msk [vmem:[#allocation2 + $0x18] sm:$0xff] %vm419_vm0, %v1729_v4  ;;  %vm1335_vm5 = vcmask 257024  }
  0x10   : > { %v392_v5 = vld [vmem:[%s1806_s12] sm:$0xf]  ;;  %v1821_v6 = vld [vmem:[%s1806_s12 + $0x8] sm:$0xf]  ;;  %v1824_v7 = vld [vmem:[%s1806_s12 + $0x10] sm:$0xf]  ;;  %s1860_s20 = scalar_lea.vmem %s2018_s2, %s1795_s7  ;;  %s1889_s29 = scalar_lea.vmem %s2019_s3, %s1795_s7 }
  0x11   : > { %v1504_v8 = vcombine.low %v392_v5, %v1821_v6  ;;  %v600_v9 = vshrl.u32 %v392_v5, 16  ;;  %v603_v10 = vshll.u32 %v392_v5, 16  ;;  %v614_v11 = vshrl.u32 %v1821_v6, 16  ;;  %v1829_v12 = vld [vmem:[%s1806_s12 + $0x18] sm:$0xf]  ;;  %vm1877_vm4 = vmor %vm596_vm2, %vm597_vm3  ;;  %s389_s17 = scalar_lea.vmem %s2022_s6, %s1572_s14 }
  0x12   : > { %v617_v13 = vshll.u32 %v1821_v6, 16  ;;  %v1505_v14 = vcombine.low %v1824_v7, %v1829_v12  ;;  %v628_v15 = vshrl.u32 %v1824_v7, 16  ;;  %v631_v16 = vshll.u32 %v1824_v7, 16  ;;  %v402_v17 = vld [vmem:[%s1812_s15] sm:$0xf] }
  0x13   : > { %1606 = vmatprep.mubr.msk.bf16.mxu0 %vm446_vm1, %v1504_v8  ;;  %v602_v19 = vrot.slane %v600_v9, 4  ;;  %v605_v20 = vrot.slane %v603_v10, 5  ;;  %v616_v21 = vrot.slane %v614_v11, 4  ;;  %v642_v22 = vshrl.u32 %v1829_v12, 16  ;;  %v1845_v23 = vld [vmem:[%s1812_s15 + $0x8] sm:$0xf] }
  0x14   : > { %v619_v24 = vrot.slane %v617_v13, 5  ;;  %1607 = vmatmul.mubr.msk.bf16.vlgmr.msra.gmra.mxu0 %vm446_vm1, %v1505_v14  ;;  %v630_v25 = vrot.slane %v628_v15, 4  ;;  %v633_v26 = vrot.slane %v631_v16, 5  ;;  %v645_v27 = vshll.u32 %v1829_v12, 16  ;;  %v1850_v28 = vld [vmem:[%s1812_s15 + $0x10] sm:$0xf] }
  0x15   : > { %v606_v29 = vor.u32 %v605_v20, %v602_v19  ;;  %v644_v30 = vrot.slane %v642_v22, 4  ;;  %v1853_v31 = vld [vmem:[%s1812_s15 + $0x18] sm:$0xf]  ;;  %v1511_v32 = vcombine.low %v402_v17, %v1845_v23  ;;  %1617 = vmatpush3.bf16.msra.mxu0 %v1692_v2  ;;  %v393_v36 = vld [vmem:[%s1806_s12 + $0x4] sm:$0x1]  ;;  %v1700_v17 = vld [vmem:[%s2020_s4 + $0x30] sm:$0xff]  }
  0x16   : > { %v620_v33 = vor.u32 %v619_v24, %v616_v21  ;;  %v647_v34 = vrot.slane %v645_v27, 5  ;;  %v1512_v35 = vcombine.low %v1850_v28, %v1853_v31  ;;  %v395_v37 = vld [vmem:[%s1806_s12 + $0xc] sm:$0x1]  ;;  %1628 = vmatprep.subr.bf16.mxu0 %v1840_v18  ;;  %v609_v40 = vshll.u32 %v393_v36, 16  ;;  %v397_v42 = vld [vmem:[%s1806_s12 + $0x14] sm:$0x1] }
  0x17   : > { %v607_v39 = vrot.slane %v606_v29, 4  ;;  %1612 = vmatprep.mubr.msk.bf16.mxu1 %vm446_vm1, %v1511_v32  ;;  %v623_v41 = vshll.u32 %v395_v37, 16  ;;  %v634_v43 = vor.u32 %v633_v26, %v630_v25  ;;  %v399_v46 = vld [vmem:[%s1806_s12 + $0x1c] sm:$0x1]  ;;  %v637_v47 = vshll.u32 %v397_v42, 16 }
  0x18   : > { %v621_v44 = vrot.slane %v620_v33, 4  ;;  %1613 = vmatmul.mubr.msk.bf16.vlgmr.msra.gmra.mxu1 %vm446_vm1, %v1512_v35  ;;  %v648_v48 = vor.u32 %v647_v34, %v644_v30  ;;  %v407_v49 = vld [vmem:[%s1860_s20] sm:$0xf]  ;;  %v611_v50 = vrot.slane %v609_v40, 5  ;;  %v651_v53 = vshll.u32 %v399_v46, 16  ;;  %v1703_v25 = vld [vmem:[%s2020_s4 + $0x38] sm:$0xff]  }
  0x19   : > { %v625_v51 = vrot.slane %v623_v41, 5  ;;  %v635_v52 = vrot.slane %v634_v43, 4  ;;  %1623 = vmatpush3.bf16.msra.mxu1 %v1800_v3  ;;  %v409_v54 = vld [vmem:[%s1860_s20 + $0x8] sm:$0xf]  ;;  %v639_v55 = vrot.slane %v637_v47, 5  ;;  %v910_v58 = vshrl.u32 %v407_v49, 16 }
  0x1a   : > { %v649_v56 = vrot.slane %v648_v48, 4  ;;  %v1525_v57 = vcombine.low %v407_v49, %v409_v54  ;;  %v411_v59 = vld [vmem:[%s1860_s20 + $0x10] sm:$0xf]  ;;  %1634 = vmatprep.subr.bf16.mxu1 %v1870_v38  ;;  %v612_v60 = vsel %vm1877_vm4, %v607_v39, %v611_v50  ;;  %v653_v62 = vrot.slane %v651_v53, 5  ;;  %v413_v0 = vld [vmem:[%s1860_s20 + $0x18] sm:$0xf] }
  0x1b   : > { %v1897_v61 = vsel %vm1877_vm4, %v621_v44, %v625_v51  ;;  %v913_v63 = vshll.u32 %v407_v49, 16  ;;  %v1903_v2 = vsel %vm1877_vm4, %v635_v52, %v639_v55  ;;  %v912_v3 = vrot.slane %v910_v58, 4  ;;  %v1697_v5 = vld [vmem:[%s1889_s29] ss:$8 sps:$4 sm:$0xff]   ;;  %v408_v22 = vld [vmem:[%s1860_s20 + $0x4] sm:$0x1] }
  0x1c   : > { %v1518_v1 = vcombine.low %v612_v60, %v1897_v61  ;;  %1624 = vmatprep.mubr.msk.bf16.mxu1 %vm446_vm1, %v1525_v57  ;;  %v924_v4 = vshrl.u32 %v409_v54, 16  ;;  %v1909_v8 = vsel %vm1877_vm4, %v649_v56, %v653_v62  ;;  %v927_v10 = vshll.u32 %v409_v54, 16  ;;  %v410_v29 = vld [vmem:[%s1860_s20 + $0xc] sm:$0x1]  ;;  %v412_v36 = vld [vmem:[%s1860_s20 + $0x14] sm:$0x1] }
  0x1d   : > { %v915_v9 = vrot.slane %v913_v63, 5  ;;  %v1526_v11 = vcombine.low %v411_v59, %v413_v0  ;;  %v1519_v13 = vcombine.low %v1903_v2, %v1909_v8  ;;  %v938_v15 = vshrl.u32 %v411_v59, 16  ;;  %v1698_v37 = vld [vmem:[%s1889_s29 + $0x10] ss:$8 sps:$4 sm:$0xff]   ;;  %v414_v41 = vld [vmem:[%s1860_s20 + $0x1c] sm:$0x1] }
  0x1e   : > { %1618 = vmatprep.mubr.msk.bf16.mxu0 %vm446_vm1, %v1518_v1  ;;  %v926_v14 = vrot.slane %v924_v4, 4  ;;  %v941_v16 = vshll.u32 %v411_v59, 16  ;;  %v929_v19 = vrot.slane %v927_v10, 5  ;;  %v952_v20 = vshrl.u32 %v413_v0, 16  ;;  %v400_v51 = vld [vmem:[%s1806_s12 + $0x20] sm:$0xf] }
  0x1f   : > { %v955_v21 = vshll.u32 %v413_v0, 16  ;;  %v916_v24 = vor.u32 %v915_v9, %v912_v3  ;;  %1619 = vmatmul.mubr.msk.bf16.vlgmr.msra.gmra.mxu0 %vm446_vm1, %v1519_v13  ;;  %v940_v26 = vrot.slane %v938_v15, 4  ;;  %v919_v30 = vshll.u32 %v408_v22, 16  ;;  %v401_v63 = vld [vmem:[%s1806_s12 + $0x24] sm:$0x1]  ;;  %v426_v13 = vld [vmem:[#allocation2 + $0x10] sm:$0xff] }
  0x20   : > { %1625 = vmatmul.mubr.msk.bf16.vlgmr.msra.gmra.mxu1 %vm446_vm1, %v1526_v11  ;;  %v943_v27 = vrot.slane %v941_v16, 5  ;;  %v954_v32 = vrot.slane %v952_v20, 4  ;;  %1629 = vmatpush3.bf16.msra.mxu0 %v1840_v18  ;;  %v930_v35 = vor.u32 %v929_v19, %v926_v14  ;;  %v933_v40 = vshll.u32 %v410_v29, 16  ;;  %v1704_v3 = vld [vmem:[%s2020_s4 + $0x40] sm:$0xff]   ;;  %v425_v20 = vld [vmem:[#allocation2 + $0x8] sm:$0xff] }
  0x21   : > { %v957_v33 = vrot.slane %v955_v21, 5  ;;  %1630 = vmatprep.mubr.msk.bf16.mxu0 %vm446_vm1, %v1697_v5  ;;  %v917_v34 = vrot.slane %v916_v24, 4  ;;  %1635 = vmatpush3.bf16.msra.mxu1 %v1870_v38  ;;  %v921_v39 = vrot.slane %v919_v30, 5  ;;  %v947_v43 = vshll.u32 %v412_v36, 16 }
  0x22   : > { %v944_v42 = vor.u32 %v943_v27, %v940_v26  ;;  %1640 = vmatprep.subr.bf16.mxu0 %v1700_v17  ;;  %v931_v44 = vrot.slane %v930_v35, 4  ;;  %v961_v47 = vshll.u32 %v414_v41, 16  ;;  %1646 = vmatprep.subr.bf16.mxu1 %v1703_v25  ;;  %v935_v48 = vrot.slane %v933_v40, 5 }
  0x23   : > { %v958_v46 = vor.u32 %v957_v33, %v954_v32  ;;  %v922_v18 = vsel %vm1877_vm4, %v917_v34, %v921_v39  ;;  %v949_v50 = vrot.slane %v947_v43, 5  ;;  %v1208_v53 = vshrl.u32 %v400_v51, 16 }
  0x24   : > { %v945_v49 = vrot.slane %v944_v42, 4  ;;  %v963_v38 = vrot.slane %v961_v47, 5  ;;  %v936_v54 = vsel %vm1877_vm4, %v931_v44, %v935_v48  ;;  %v1546_v56 = vcombine.low %v1821_v6, %v1824_v7 }
  0x25   : > { %v959_v52 = vrot.slane %v958_v46, 4  ;;  %v1211_v57 = vshll.u32 %v400_v51, 16  ;;  %v1553_v58 = vcombine.low %v1845_v23, %v1850_v28  ;;  %v1539_v59 = vcombine.low %v922_v18, %v936_v54  ;;  %v406_v23 = vld [vmem:[%s1812_s15 + $0x20] sm:$0xf] }
  0x26   : > { %v950_v55 = vsel %vm1877_vm4, %v945_v49, %v949_v50  ;;  %v1210_v62 = vrot.slane %v1208_v53, 4  ;;  %v1217_v6 = vshll.u32 %v401_v63, 16  ;;  %v1547_v28 = vcombine.low %v1829_v12, %v400_v51 }
  0x27   : > { %v964_v60 = vsel %vm1877_vm4, %v959_v52, %v963_v38  ;;  %1631 = vmatmul.mubr.msk.bf16.vlgmr.msra.gmra.mxu0 %vm446_vm1, %v1698_v37  ;;  %v1213_v1 = vrot.slane %v1211_v57, 5  ;;  %1636 = vmatprep.mubr.msk.bf16.mxu1 %vm446_vm1, %v1539_v59  ;;  %v1560_v4 = vcombine.low %v1897_v61, %v1903_v2  ;;  %v1554_v10 = vcombine.low %v1853_v31, %v406_v23  ;;  %v424_v2 = vld [vmem:[#allocation2] sm:$0xff]  ;;  %v427_v31 = vld [vmem:[#allocation2 + $0x18] sm:$0xff] }
  0x28   : > { %v1540_v0 = vcombine.low %v950_v55, %v964_v60  ;;  %1641 = vmatpush3.bf16.msra.mxu0 %v1700_v17  ;;  %1642 = vmatprep.mubr.msk.bf16.mxu0 %vm446_vm1, %v1546_v56  ;;  %v1219_v9 = vrot.slane %v1217_v6, 5 }
  0x29   : > { %v1214_v7 = vor.u32 %v1213_v1, %v1210_v62  ;;  %1652 = vmatprep.subr.bf16.mxu0 %v1704_v3 }
  0x2a   : > { %1637 = vmatmul.mubr.msk.bf16.vlgmr.msra.gmra.mxu1 %vm446_vm1, %v1540_v0 }
  0x2b   : > { %1647 = vmatpush3.bf16.msra.mxu1 %v1703_v25  ;;  %1648 = vmatprep.mubr.msk.bf16.mxu1 %vm446_vm1, %v1553_v58  ;;  %v1215_v5 = vrot.slane %v1214_v7, 4 }
  0x2d   : > { %v1220_v11 = vsel %vm1877_vm4, %v1215_v5, %v1219_v9 }
  0x2e   : > { %v1561_v12 = vcombine.low %v1909_v8, %v1220_v11 }
  0x2f   : > { %1643 = vmatmul.mubr.msk.bf16.vlgmr.msra.gmra.mxu0 %vm446_vm1, %v1547_v28 }
  0x30   : > { %1653 = vmatpush3.bf16.msra.mxu0 %v1704_v3  ;;  %1654 = vmatprep.mubr.msk.bf16.mxu0 %vm446_vm1, %v1560_v4 }
  0x32   : > { %1649 = vmatmul.mubr.msk.bf16.vlgmr.msra.gmra.mxu1 %vm446_vm1, %v1554_v10 }
  0x37   : > { %1655 = vmatmul.mubr.msk.bf16.vlgmr.msra.gmra.mxu0 %vm446_vm1, %v1561_v12 }
  0xd4   : > { %v1608_v61 = vpop.f32.mrf.mxu0 }
  0xd5   : > { %v504_v14 = vadd.f32 %v1608_v61, %v426_v13 }
  0xd6   : > { %v487_v15 = vpop.f32.mrf.mxu0 }
  0xd7   : > { %508 = vst.msk [vmem:[#allocation2 + $0x10] sm:$0xff] %vm419_vm0, %v504_v14  ;;  %v502_v16 = vadd.f32 %v487_v15, %v424_v2 }
  0xd8   : > { %v1609_v17 = vpop.f32.mrf.mxu0  ;;  %v1614_v19 = vpop.f32.mrf.mxu1 }
  0xd9   : > { %506 = vst.msk [vmem:[#allocation2] sm:$0xff] %vm419_vm0, %v502_v16  ;;  %v505_v45 = vadd.f32 %v1609_v17, %v427_v31 }
  0xda   : > { %v490_v21 = vpop.f32.mrf.mxu0  ;;  %v573_v22 = vpop.f32.mrf.mxu1 }
  0xdb   : > { %509 = vst.msk [vmem:[#allocation2 + $0x18] sm:$0xff] %vm419_vm0, %v505_v45  ;;  %v503_v8 = vadd.f32 %v490_v21, %v425_v20 }
  0xdc   : > { %v1615_v27 = vpop.f32.mrf.mxu1 }
  0xdd   : > { %507 = vst.msk [vmem:[#allocation2 + $0x8] sm:$0xff] %vm419_vm0, %v503_v8 }
  0xde   : > { %v512_v24 = vld [vmem:[#allocation2 + $0x10] sm:$0xff]  ;;  %v576_v35 = vpop.f32.mrf.mxu1 }
  0xdf   : > { %v590_v25 = vadd.f32 %v1614_v19, %v512_v24  ;;  %v1620_v32 = vpop.f32.mrf.mxu0 }
  0xe0   : > { %v510_v26 = vld [vmem:[#allocation2] sm:$0xff]  ;;  %v1626_v46 = vpop.f32.mrf.mxu1 }
  0xe1   : > { %594 = vst.msk [vmem:[#allocation2 + $0x10] sm:$0xff] %vm419_vm0, %v590_v25  ;;  %v588_v29 = vadd.f32 %v573_v22, %v510_v26  ;;  %v714_v37 = vpop.f32.mrf.mxu0 }
  0xe2   : > { %v513_v30 = vld [vmem:[#allocation2 + $0x18] sm:$0xff]  ;;  %v800_v50 = vpop.f32.mrf.mxu1 }
  0xe3   : > { %592 = vst.msk [vmem:[#allocation2] sm:$0xff] %vm419_vm0, %v588_v29  ;;  %v591_v33 = vadd.f32 %v1615_v27, %v513_v30  ;;  %v1621_v42 = vpop.f32.mrf.mxu0 }
  0xe4   : > { %v511_v34 = vld [vmem:[#allocation2 + $0x8] sm:$0xff]  ;;  %v1627_v53 = vpop.f32.mrf.mxu1 }
  0xe5   : > { %595 = vst.msk [vmem:[#allocation2 + $0x18] sm:$0xff] %vm419_vm0, %v591_v33  ;;  %v589_v36 = vadd.f32 %v576_v35, %v511_v34  ;;  %v717_v48 = vpop.f32.mrf.mxu0 }
  0xe6   : > { %v803_v59 = vpop.f32.mrf.mxu1 }
  0xe7   : > { %593 = vst.msk [vmem:[#allocation2 + $0x8] sm:$0xff] %vm419_vm0, %v589_v36  ;;  %v1632_v56 = vpop.f32.mrf.mxu0 }
  0xe8   : > { %v657_v39 = vld [vmem:[#allocation2 + $0x10] sm:$0xff] }
  0xe9   : > { %v731_v40 = vadd.f32 %v1620_v32, %v657_v39  ;;  %v886_v62 = vpop.f32.mrf.mxu0 }
  0xea   : > { %v655_v41 = vld [vmem:[#allocation2] sm:$0xff]  ;;  %v1638_v23 = vpop.f32.mrf.mxu1 }
  0xeb   : > { %735 = vst.msk [vmem:[#allocation2 + $0x10] sm:$0xff] %vm419_vm0, %v731_v40  ;;  %v729_v43 = vadd.f32 %v714_v37, %v655_v41  ;;  %v1633_v3 = vpop.f32.mrf.mxu0 }
  0xec   : > { %v658_v44 = vld [vmem:[#allocation2 + $0x18] sm:$0xff]  ;;  %v1024_v10 = vpop.f32.mrf.mxu1 }
  0xed   : > { %733 = vst.msk [vmem:[#allocation2] sm:$0xff] %vm419_vm0, %v729_v43  ;;  %v732_v47 = vadd.f32 %v1621_v42, %v658_v44  ;;  %v889_v5 = vpop.f32.mrf.mxu0 }
  0xee   : > { %v656_v18 = vld [vmem:[#allocation2 + $0x8] sm:$0xff]  ;;  %v1639_v61 = vpop.f32.mrf.mxu1 }
  0xef   : > { %736 = vst.msk [vmem:[#allocation2 + $0x18] sm:$0xff] %vm419_vm0, %v732_v47  ;;  %v730_v49 = vadd.f32 %v717_v48, %v656_v18  ;;  %v1644_v15 = vpop.f32.mrf.mxu0 }
  0xf0   : > { %v1027_v17 = vpop.f32.mrf.mxu1 }
  0xf1   : > { %734 = vst.msk [vmem:[#allocation2 + $0x8] sm:$0xff] %vm419_vm0, %v730_v49  ;;  %v1104_v20 = vpop.f32.mrf.mxu0 }
  0xf2   : > { %v739_v51 = vld [vmem:[#allocation2 + $0x10] sm:$0xff]  ;;  %v1650_v26 = vpop.f32.mrf.mxu1 }
  0xf3   : > { %v817_v52 = vadd.f32 %v1626_v46, %v739_v51  ;;  %v1645_v22 = vpop.f32.mrf.mxu0 }
  0xf4   : > { %v737_v38 = vld [vmem:[#allocation2] sm:$0xff]  ;;  %v1184_v33 = vpop.f32.mrf.mxu1 }
  0xf5   : > { %821 = vst.msk [vmem:[#allocation2 + $0x10] sm:$0xff] %vm419_vm0, %v817_v52  ;;  %v815_v54 = vadd.f32 %v800_v50, %v737_v38  ;;  %v1107_v30 = vpop.f32.mrf.mxu0 }
  0xf6   : > { %v740_v55 = vld [vmem:[#allocation2 + $0x18] sm:$0xff]  ;;  %v1651_v37 = vpop.f32.mrf.mxu1 }
  0xf7   : > { %819 = vst.msk [vmem:[#allocation2] sm:$0xff] %vm419_vm0, %v815_v54  ;;  %v818_v57 = vadd.f32 %v1627_v53, %v740_v55  ;;  %v1656_v41 = vpop.f32.mrf.mxu0 }
  0xf8   : > { %v738_v58 = vld [vmem:[#allocation2 + $0x8] sm:$0xff]  ;;  %v1187_v44 = vpop.f32.mrf.mxu1 }
  0xf9   : > { %822 = vst.msk [vmem:[#allocation2 + $0x18] sm:$0xff] %vm419_vm0, %v818_v57  ;;  %v816_v60 = vadd.f32 %v803_v59, %v738_v58  ;;  %v1277_v47 = vpop.f32.mrf.mxu0 }
  0xfb   : > { %820 = vst.msk [vmem:[#allocation2 + $0x8] sm:$0xff] %vm419_vm0, %v816_v60  ;;  %v1657_v50 = vpop.f32.mrf.mxu0 }
  0xfc   : > { %v825_v63 = vld [vmem:[#allocation2 + $0x10] sm:$0xff] }
  0xfd   : > { %v903_v0 = vadd.f32 %v1632_v56, %v825_v63  ;;  %v1280_v54 = vpop.f32.mrf.mxu0  ;;  %v1565_v56 = vld [vmem:[%s2021_s5] ss:$0 sm:$0xff] }
  0xfe   : > { %v823_v1 = vld [vmem:[#allocation2] sm:$0xff] }
  0xff   : > { %907 = vst.msk [vmem:[#allocation2 + $0x10] sm:$0xff] %vm419_vm0, %v903_v0  ;;  %v901_v6 = vadd.f32 %v886_v62, %v823_v1 }
 0x100   : > { %v826_v7 = vld [vmem:[#allocation2 + $0x18] sm:$0xff] }
 0x101   : > { %905 = vst.msk [vmem:[#allocation2] sm:$0xff] %vm419_vm0, %v901_v6  ;;  %v904_v28 = vadd.f32 %v1633_v3, %v826_v7 }
 0x102   : > { %v824_v4 = vld [vmem:[#allocation2 + $0x8] sm:$0xff] }
 0x103   : > { %908 = vst.msk [vmem:[#allocation2 + $0x18] sm:$0xff] %vm419_vm0, %v904_v28  ;;  %v902_v9 = vadd.f32 %v889_v5, %v824_v4 }
 0x105   : > { %906 = vst.msk [vmem:[#allocation2 + $0x8] sm:$0xff] %vm419_vm0, %v902_v9 }
 0x106   : > { %v967_v11 = vld [vmem:[#allocation2 + $0x10] sm:$0xff] }
 0x107   : > { %v1041_v12 = vadd.f32 %v1638_v23, %v967_v11 }
 0x108   : > { %v965_v13 = vld [vmem:[#allocation2] sm:$0xff] }
 0x109   : > { %1045 = vst.msk [vmem:[#allocation2 + $0x10] sm:$0xff] %vm419_vm0, %v1041_v12  ;;  %v1039_v2 = vadd.f32 %v1024_v10, %v965_v13 }
 0x10a   : > { %v968_v14 = vld [vmem:[#allocation2 + $0x18] sm:$0xff] }
 0x10b   : > { %1043 = vst.msk [vmem:[#allocation2] sm:$0xff] %vm419_vm0, %v1039_v2  ;;  %v1042_v31 = vadd.f32 %v1639_v61, %v968_v14 }
 0x10c   : > { %v966_v16 = vld [vmem:[#allocation2 + $0x8] sm:$0xff] }
 0x10d   : > { %1046 = vst.msk [vmem:[#allocation2 + $0x18] sm:$0xff] %vm419_vm0, %v1042_v31  ;;  %v1040_v19 = vadd.f32 %v1027_v17, %v966_v16 }
 0x10f   : > { %1044 = vst.msk [vmem:[#allocation2 + $0x8] sm:$0xff] %vm419_vm0, %v1040_v19 }
 0x110   : > { %v1049_v45 = vld [vmem:[#allocation2 + $0x10] sm:$0xff] }
 0x111   : > { %v1121_v21 = vadd.f32 %v1644_v15, %v1049_v45 }
 0x112   : > { %v1047_v8 = vld [vmem:[#allocation2] sm:$0xff] }
 0x113   : > { %1125 = vst.msk [vmem:[#allocation2 + $0x10] sm:$0xff] %vm419_vm0, %v1121_v21  ;;  %v1119_v24 = vadd.f32 %v1104_v20, %v1047_v8 }
 0x114   : > { %v1050_v25 = vld [vmem:[#allocation2 + $0x18] sm:$0xff] }
 0x115   : > { %1123 = vst.msk [vmem:[#allocation2] sm:$0xff] %vm419_vm0, %v1119_v24  ;;  %v1122_v27 = vadd.f32 %v1645_v22, %v1050_v25 }
 0x116   : > { %v1048_v29 = vld [vmem:[#allocation2 + $0x8] sm:$0xff] }
 0x117   : > { %1126 = vst.msk [vmem:[#allocation2 + $0x18] sm:$0xff] %vm419_vm0, %v1122_v27  ;;  %v1120_v32 = vadd.f32 %v1107_v30, %v1048_v29 }
 0x119   : > { %1124 = vst.msk [vmem:[#allocation2 + $0x8] sm:$0xff] %vm419_vm0, %v1120_v32 }
 0x11a   : > { %v1129_v34 = vld [vmem:[#allocation2 + $0x10] sm:$0xff] }
 0x11b   : > { %v1201_v35 = vadd.f32 %v1650_v26, %v1129_v34 }
 0x11c   : > { %v1127_v36 = vld [vmem:[#allocation2] sm:$0xff] }
 0x11d   : > { %1205 = vst.msk [vmem:[#allocation2 + $0x10] sm:$0xff] %vm419_vm0, %v1201_v35  ;;  %v1199_v39 = vadd.f32 %v1184_v33, %v1127_v36 }
 0x11e   : > { %v1130_v40 = vld [vmem:[#allocation2 + $0x18] sm:$0xff] }
 0x11f   : > { %1203 = vst.msk [vmem:[#allocation2] sm:$0xff] %vm419_vm0, %v1199_v39  ;;  %v1202_v42 = vadd.f32 %v1651_v37, %v1130_v40 }
 0x120   : > { %v1128_v43 = vld [vmem:[#allocation2 + $0x8] sm:$0xff] }
 0x121   : > { %1206 = vst.msk [vmem:[#allocation2 + $0x18] sm:$0xff] %vm419_vm0, %v1202_v42  ;;  %v1200_v46 = vadd.f32 %v1187_v44, %v1128_v43 }
 0x123   : > { %1204 = vst.msk [vmem:[#allocation2 + $0x8] sm:$0xff] %vm419_vm0, %v1200_v46 }
 0x124   : > { %v1223_v18 = vld [vmem:[#allocation2 + $0x10] sm:$0xff] }
 0x125   : > { %v1294_v48 = vadd.f32 %v1656_v41, %v1223_v18 }
 0x126   : > { %v1221_v49 = vld [vmem:[#allocation2] sm:$0xff] }
 0x127   : > { %1298 = vst.msk [vmem:[#allocation2 + $0x10] sm:$0xff] %vm419_vm0, %v1294_v48  ;;  %v1292_v51 = vadd.f32 %v1277_v47, %v1221_v49 }
 0x128   : > { %v1224_v52 = vld [vmem:[#allocation2 + $0x18] sm:$0xff] }
 0x129   : > { %1296 = vst.msk [vmem:[#allocation2] sm:$0xff] %vm419_vm0, %v1292_v51  ;;  %v1295_v38 = vadd.f32 %v1657_v50, %v1224_v52 }
 0x12a   : > { %v1222_v53 = vld [vmem:[#allocation2 + $0x8] sm:$0xff] }
 0x12b   : > { %1299 = vst.msk [vmem:[#allocation2 + $0x18] sm:$0xff] %vm419_vm0, %v1295_v38  ;;  %v1293_v55 = vadd.f32 %v1280_v54, %v1222_v53 }
 0x12d   : > { %1297 = vst.msk [vmem:[#allocation2 + $0x8] sm:$0xff] %vm419_vm0, %v1293_v55 }
 0x12e   : > { %v1302_v57 = vld [vmem:[#allocation2 + $0x10] sm:$0xff] }
 0x12f   : > { %v1313_v58 = vadd.f32 %v1565_v56, %v1302_v57 }
 0x130   : > { %v1300_v59 = vld [vmem:[#allocation2] sm:$0xff] }
 0x131   : > { %v1317_v60 = vmax.f32 %v1313_v58, 0.0  ;;  %v1311_v62 = vadd.f32 %v1565_v56, %v1300_v59 }
 0x132   : > { %v1303_v63 = vld [vmem:[#allocation2 + $0x18] sm:$0xff] }
 0x133   : > { %v1575_v0 = vpack.c.bf16 %v1317_v60, %v1317_v60  ;;  %v1315_v1 = vmax.f32 %v1311_v62, 0.0  ;;  %v1314_v3 = vadd.f32 %v1565_v56, %v1303_v63 }
 0x134   : > { %v1301_v6 = vld [vmem:[#allocation2 + $0x8] sm:$0xff] }
 0x135   : > { %1338 = vst.msk [vmem:[%s389_s17 + $0x8] sm:$0xf] %vm1335_vm5, %v1575_v0  ;;  %v1573_v7 = vpack.c.bf16 %v1315_v1, %v1315_v1  ;;  %v1318_v23 = vmax.f32 %v1314_v3, 0.0  ;;  %v1312_v28 = vadd.f32 %v1565_v56, %v1301_v6 }
 0x137   : > { %1336 = vst.msk [vmem:[%s389_s17] sm:$0xf] %vm1335_vm5, %v1573_v7  ;;  %v1576_v4 = vpack.c.bf16 %v1318_v23, %v1318_v23  ;;  %v1316_v5 = vmax.f32 %v1312_v28, 0.0 }
 0x139   : > { %1339 = vst.msk [vmem:[%s389_s17 + $0xc] sm:$0xf] %vm1335_vm5, %v1576_v4  ;;  %v1574_v9 = vpack.c.bf16 %v1316_v5, %v1316_v5 }
 0x13b   : > { %1337 = vst.msk [vmem:[%s389_s17 + $0x4] sm:$0xf] %vm1335_vm5, %v1574_v9 }
 0x13c PF: > { %s16_s23 = sadd.s32 1, %s1727_s23   ;;  %s2025_s21 = smov %s1723_s22 }
 0x13d   : > { %p13_p5 = scmp.ge.s32.totalorder %s16_s23, 4   ;;  %s2026_s22 = smov %s2028_s24 }
 0x13f   :  { %15 = sbr.rel (!%p13_p5) target bundleno = 2 (0x2), region = 91 }

// kernel: forward.3
= control target key start
LH: loop header
LB: loop body
LE: loop exit
PB: predicated region body
PF: predicated region fallthrough
CT: control target
= control target key end

     0   :  { %s2362_s21 = smov 0   ;;  %s2364_s22 = smov 0   ;;  %s2816_s0 = inlined_call_operand.vmem [shape: bf16[2,1,9,9,4], index: 0, kind: input, shape index: {}]   ;;  %s2817_s1 = inlined_call_operand.vmem [shape: bf16[2,1,9,9,4], index: 1, kind: input, shape index: {}]   ;;  %s2818_s2 = inlined_call_operand.vmem [shape: bf16[2,1,9,9,4], index: 2, kind: input, shape index: {}]   ;;  %s2819_s3 = inlined_call_operand.vmem [shape: bf16[2,1,9,9,4], index: 3, kind: input, shape index: {}]   ;;  %s2820_s4 = inlined_call_operand.vmem [shape: bf16[9,4,16], index: 4, kind: input, shape index: {}]   ;;  %s2821_s5 = inlined_call_operand.vmem [shape: f32[1,16], index: 5, kind: input, shape index: {}]   ;;  %s2822_s6 = inlined_call_operand.vmem [shape: bf16[2,64,16], index: 6, kind: output, shape index: {}]  }
   0x1   :  { %s2366_s23 = smov 0  }
   0x2 LB: > { %s28_s24 = sadd.s32 1, %s2320_s22  ;;  %p1998_p0 = scmp.ge.s32.totalorder %s2324_s23, 1  ;;  %s2324_s23 = sphi %s2366_s23, %s16_s23   ;;  %s2320_s22 = sphi %s2364_s22, %s2826_s22   ;;  %s2316_s21 = sphi %s2362_s21, %s2825_s21  }
   0x3   : > { %p30_p1 = scmp.ge.s32.totalorder %s28_s24, 2  ;;  %p280_p2 = scmp.lt.s32.totalorder %s2324_s23, 3 }
   0x5   : > { %s2828_s24 = smov (%p30_p1, %s28_s24), 0  ;;  %p281_p3 = pnand %p1998_p0, %p280_p2 }
   0x6   : > { %p345_p4 = scmp.lt.s32.totalorder (!%p281_p3), %s2316_s21, 1 }
   0x7   : > { %284 = sbr.rel (%p281_p3) target bundleno = 331 (0x14b), region = 44 }
   0xc   : > { %v460_v0 = vld [vmem:[%s2820_s4] sm:$0x3]  ;;  %vm494_vm0 = vcmask 1041408   ;;  %vm443_vm1 = vcmask 130048   ;;  %v2013_v2 = vld [vmem:[%s2820_s4 + $0x2] sm:$0x3] }
   0xd   : > { %2243 = vmatprep.subr.msk.bf16.mxu1 %vm494_vm0, %v460_v0  ;;  %2242 = vmatprep.subr.msk.bf16.mxu0 %vm494_vm0, %v460_v0  ;;  %v496_v1 = vsel %vm494_vm0, %v460_v0, 0  ;;  %v2022_v3 = vld [vmem:[%s2820_s4 + $0x4] sm:$0x3]  ;;  %s2830_s21 = smov (!%p345_p4, %s2316_s21), 1  ;;  %v2326_v4 = vmov 0.0   ;;  %vm481_vm2 = vcmask 31744  }
   0xe   : > { %2241 = vmatpush3.bf16.msra.mxu1 %v496_v1  ;;  %2151 = vmatpush3.bf16.msra.mxu0 %v496_v1  ;;  %446 = vst.msk [vmem:[#allocation2 + $0x10] sm:$0xff] %vm443_vm1, %v2326_v4  ;;  %444 = vst.msk [vmem:[#allocation2] sm:$0xff] %vm443_vm1, %v2326_v4  ;;  %v2407_v5 = vld [vmem:[%s2820_s4 + $0x6] sm:$0x3]  ;;  %s2410_s9 = smul.u32 72, %s2830_s21  ;;  %v2419_v6 = vsel %vm494_vm0, %v2013_v2, 0 }
   0xf   : > { %445 = vst.msk [vmem:[#allocation2 + $0x8] sm:$0xff] %vm443_vm1, %v2326_v4  ;;  %447 = vst.msk [vmem:[#allocation2 + $0x18] sm:$0xff] %vm443_vm1, %v2326_v4  ;;  %2244 = vmatprep.subr.msk.bf16.mxu1 %vm494_vm0, %v2013_v2  ;;  %2245 = vmatprep.subr.msk.bf16.mxu0 %vm494_vm0, %v2022_v3  ;;  %v855_v7 = vsel %vm494_vm0, %v2022_v3, 0  ;;  %v2424_v8 = vsel %vm494_vm0, %v2407_v5, 0  ;;  %v2040_v9 = vld [vmem:[%s2820_s4 + $0x8] sm:$0x3] }
  0x10   : > { %448 = vst.msk [vmem:[#allocation2 + $0x20] sm:$0xff] %vm443_vm1, %v2326_v4  ;;  %449 = vst.msk [vmem:[#allocation2 + $0x28] sm:$0xff] %vm443_vm1, %v2326_v4  ;;  %s2416_s12 = scalar_lea.vmem %s2816_s0, %s2410_s9  ;;  %vm705_vm3 = vsmask.f32 3328  ;;  %vm706_vm4 = vsmask.f32 7440  ;;  %s2458_s17 = scalar_lea.vmem %s2817_s1, %s2410_s9 }
  0x11   : > { %450 = vst.msk [vmem:[#allocation2 + $0x30] sm:$0xff] %vm443_vm1, %v2326_v4  ;;  %451 = vst.msk [vmem:[#allocation2 + $0x38] sm:$0xff] %vm443_vm1, %v2326_v4  ;;  %v392_v10 = vld [vmem:[%s2416_s12] sm:$0xf]  ;;  %v2431_v11 = vld [vmem:[%s2416_s12 + $0x8] sm:$0xf]  ;;  %s2539_s20 = scalar_lea.vmem %s2818_s2, %s2410_s9  ;;  %s2575_s7 = scalar_lea.vmem %s2819_s3, %s2410_s9 }
  0x12   : > { %v2434_v12 = vld [vmem:[%s2416_s12 + $0x18] sm:$0xf]  ;;  %v2005_v13 = vcombine.low %v392_v10, %v2431_v11  ;;  %v709_v14 = vshrl.u32 %v392_v10, 16  ;;  %v712_v15 = vshll.u32 %v392_v10, 16  ;;  %v723_v16 = vshrl.u32 %v2431_v11, 16  ;;  %vm2505_vm5 = vmor %vm705_vm3, %vm706_vm4  ;;  %s2096_s14 = sshll.u32 %s2830_s21, 5 }
  0x13   : > { %v2439_v17 = vld [vmem:[%s2416_s12 + $0x20] sm:$0xf]  ;;  %v726_v18 = vshll.u32 %v2431_v11, 16  ;;  %v2443_v19 = vld [vmem:[%s2416_s12 + $0x28] sm:$0xf]  ;;  %v751_v20 = vshrl.u32 %v2434_v12, 16 }
  0x14   : > { %v754_v21 = vshll.u32 %v2434_v12, 16  ;;  %v765_v22 = vshrl.u32 %v2439_v17, 16  ;;  %2152 = vmatprep.mubr.msk.bf16.mxu0 %vm481_vm2, %v2005_v13  ;;  %v711_v23 = vrot.slane %v709_v14, 4  ;;  %v714_v24 = vrot.slane %v712_v15, 5  ;;  %v2452_v27 = vld [vmem:[%s2416_s12 + $0x10] sm:$0xf] }
  0x15   : > { %v725_v25 = vrot.slane %v723_v16, 4  ;;  %v2007_v26 = vcombine.low %v2439_v17, %v2443_v19  ;;  %v728_v28 = vrot.slane %v726_v18, 5  ;;  %v753_v29 = vrot.slane %v751_v20, 4  ;;  %v2461_v31 = vld [vmem:[%s2416_s12 + $0x30] sm:$0xf] }
  0x16   : > { %v767_v30 = vrot.slane %v765_v22, 4  ;;  %v2464_v32 = vsel %vm494_vm0, %v2040_v9, 0  ;;  %v715_v33 = vor.u32 %v714_v24, %v711_v23  ;;  %v768_v34 = vshll.u32 %v2439_v17, 16  ;;  %v2471_v37 = vld [vmem:[%s2416_s12 + $0x38] sm:$0xf] }
  0x17   : > { %2156 = vmatprep.mubr.msk.bf16.mxu1 %vm481_vm2, %v2007_v26  ;;  %v779_v35 = vshrl.u32 %v2443_v19, 16  ;;  %v782_v36 = vshll.u32 %v2443_v19, 16  ;;  %v729_v38 = vor.u32 %v728_v28, %v725_v25  ;;  %v756_v39 = vrot.slane %v754_v21, 5  ;;  %v410_v42 = vld [vmem:[%s2458_s17] sm:$0xf] }
  0x18   : > { %v2006_v40 = vcombine.low %v2452_v27, %v2434_v12  ;;  %v737_v41 = vshrl.u32 %v2452_v27, 16  ;;  %v716_v43 = vrot.slane %v715_v33, 4  ;;  %v770_v44 = vrot.slane %v768_v34, 5  ;;  %v2478_v47 = vld [vmem:[%s2458_s17 + $0x8] sm:$0xf] }
  0x19   : > { %v781_v45 = vrot.slane %v779_v35, 4  ;;  %v784_v46 = vrot.slane %v782_v36, 5  ;;  %v730_v48 = vrot.slane %v729_v38, 4  ;;  %v740_v50 = vshll.u32 %v2452_v27, 16  ;;  %v2485_v52 = vld [vmem:[%s2458_s17 + $0x10] sm:$0xf] }
  0x1a   : > { %2153 = vmatmul.mubr.msk.bf16.vlgmr.msra.gmra.mxu0 %vm481_vm2, %v2006_v40  ;;  %v739_v49 = vrot.slane %v737_v41, 4  ;;  %v2008_v51 = vcombine.low %v2461_v31, %v2471_v37  ;;  %v771_v53 = vor.u32 %v770_v44, %v767_v30  ;;  %v2488_v55 = vld [vmem:[%s2458_s17 + $0x18] sm:$0xf]  ;;  %v393_v56 = vld [vmem:[%s2416_s12 + $0x4] sm:$0x1]  ;;  %v793_v59 = vshrl.u32 %v2461_v31, 16 }
  0x1b   : > { %v785_v54 = vor.u32 %v784_v46, %v781_v45  ;;  %2171 = vmatpush3.bf16.msra.mxu0 %v855_v7  ;;  %v395_v57 = vld [vmem:[%s2416_s12 + $0xc] sm:$0x1]  ;;  %v742_v58 = vrot.slane %v740_v50, 5  ;;  %v796_v60 = vshll.u32 %v2461_v31, 16  ;;  %v2014_v61 = vcombine.low %v410_v42, %v2478_v47  ;;  %v397_v62 = vld [vmem:[%s2416_s12 + $0x14] sm:$0x1] }
  0x1c   : > { %2157 = vmatmul.mubr.msk.bf16.vlgmr.msra.gmra.mxu1 %vm481_vm2, %v2008_v51  ;;  %2247 = vmatprep.subr.msk.bf16.mxu0 %vm494_vm0, %v2040_v9  ;;  %v772_v63 = vrot.slane %v771_v53, 4  ;;  %v807_v0 = vshrl.u32 %v2471_v37, 16  ;;  %v810_v1 = vshll.u32 %v2471_v37, 16  ;;  %v718_v2 = vshll.u32 %v393_v56, 16  ;;  %v399_v3 = vld [vmem:[%s2416_s12 + $0x1c] sm:$0x1] }
  0x1d   : > { %2161 = vmatpush3.bf16.msra.mxu1 %v2419_v6  ;;  %2162 = vmatprep.mubr.msk.bf16.mxu1 %vm481_vm2, %v2014_v61  ;;  %v732_v7 = vshll.u32 %v395_v57, 16  ;;  %v743_v9 = vor.u32 %v742_v58, %v739_v49  ;;  %v746_v10 = vshll.u32 %v397_v62, 16  ;;  %v757_v13 = vor.u32 %v756_v39, %v753_v29  ;;  %v2512_v6 = vld [vmem:[%s2458_s17 + $0x20] sm:$0xf]  ;;  %v2515_v14 = vld [vmem:[%s2458_s17 + $0x28] sm:$0xf] }
  0x1e   : > { %2246 = vmatprep.subr.msk.bf16.mxu1 %vm494_vm0, %v2407_v5  ;;  %v786_v15 = vrot.slane %v785_v54, 4  ;;  %v2015_v16 = vcombine.low %v2485_v52, %v2488_v55  ;;  %v720_v18 = vrot.slane %v718_v2, 5  ;;  %v760_v20 = vshll.u32 %v399_v3, 16  ;;  %v401_v24 = vld [vmem:[%s2416_s12 + $0x24] sm:$0x1] }
  0x1f   : > { %v734_v21 = vrot.slane %v732_v7, 5  ;;  %v744_v22 = vrot.slane %v743_v9, 4  ;;  %v748_v5 = vrot.slane %v746_v10, 5  ;;  %v758_v23 = vrot.slane %v757_v13, 4  ;;  %v403_v29 = vld [vmem:[%s2416_s12 + $0x2c] sm:$0x1] }
  0x20   : > { %v721_v25 = vsel %vm2505_vm5, %v716_v43, %v720_v18  ;;  %v762_v26 = vrot.slane %v760_v20, 5  ;;  %v2016_v28 = vcombine.low %v2512_v6, %v2515_v14  ;;  %v774_v30 = vshll.u32 %v401_v24, 16  ;;  %v405_v33 = vld [vmem:[%s2416_s12 + $0x34] sm:$0x1]  ;;  %v407_v38 = vld [vmem:[%s2416_s12 + $0x3c] sm:$0x1] }
  0x21   : > { %v2528_v34 = vsel %vm2505_vm5, %v730_v48, %v734_v21  ;;  %v2532_v35 = vsel %vm2505_vm5, %v744_v22, %v748_v5  ;;  %v788_v36 = vshll.u32 %v403_v29, 16  ;;  %v795_v39 = vrot.slane %v793_v59, 4  ;;  %v2544_v40 = vld [vmem:[%s2820_s4 + $0xa] sm:$0x3]  ;;  %v2552_v43 = vld [vmem:[%s2458_s17 + $0x30] sm:$0xf] }
  0x22   : > { %v2023_v41 = vcombine.low %v721_v25, %v2528_v34  ;;  %v2549_v42 = vsel %vm2505_vm5, %v758_v23, %v762_v26  ;;  %v776_v44 = vrot.slane %v774_v30, 5  ;;  %v798_v45 = vrot.slane %v796_v60, 5  ;;  %v2058_v46 = vld [vmem:[%s2820_s4 + $0xc] sm:$0x3]  ;;  %v2561_v49 = vld [vmem:[%s2458_s17 + $0x38] sm:$0xf] }
  0x23   : > { %v2024_v48 = vcombine.low %v2532_v35, %v2549_v42  ;;  %v790_v50 = vrot.slane %v788_v36, 5  ;;  %v802_v51 = vshll.u32 %v405_v33, 16  ;;  %v809_v53 = vrot.slane %v807_v0, 4  ;;  %v419_v59 = vld [vmem:[%s2539_s20] sm:$0xf] }
  0x24   : > { %2163 = vmatmul.mubr.msk.bf16.vlgmr.msra.gmra.mxu1 %vm481_vm2, %v2015_v16  ;;  %2172 = vmatprep.mubr.msk.bf16.mxu0 %vm481_vm2, %v2023_v41  ;;  %v2567_v54 = vsel %vm2505_vm5, %v772_v63, %v776_v44  ;;  %v799_v56 = vor.u32 %v798_v45, %v795_v39  ;;  %v812_v57 = vrot.slane %v810_v1, 5  ;;  %v816_v58 = vshll.u32 %v407_v38, 16  ;;  %v421_v60 = vld [vmem:[%s2539_s20 + $0x8] sm:$0xf]  ;;  %v423_v10 = vld [vmem:[%s2539_s20 + $0x10] sm:$0xf] }
  0x25   : > { %2181 = vmatpush3.bf16.msra.mxu1 %v2424_v8  ;;  %2173 = vmatmul.mubr.msk.bf16.vlgmr.msra.gmra.mxu0 %vm481_vm2, %v2024_v48  ;;  %v2581_v8 = vsel %vm2505_vm5, %v786_v15, %v790_v50  ;;  %v804_v61 = vrot.slane %v802_v51, 5  ;;  %v2017_v2 = vcombine.low %v2552_v43, %v2561_v49  ;;  %v1191_v3 = vshrl.u32 %v419_v59, 16  ;;  %v425_v18 = vld [vmem:[%s2539_s20 + $0x18] sm:$0xf]  ;;  %v427_v20 = vld [vmem:[%s2539_s20 + $0x20] sm:$0xf] }
  0x26   : > { %2166 = vmatprep.mubr.msk.bf16.mxu1 %vm481_vm2, %v2016_v28  ;;  %v2025_v62 = vcombine.low %v2567_v54, %v2581_v8  ;;  %v800_v63 = vrot.slane %v799_v56, 4  ;;  %v813_v0 = vor.u32 %v812_v57, %v809_v53  ;;  %v818_v1 = vrot.slane %v816_v58, 5  ;;  %2191 = vmatpush3.bf16.msra.mxu0 %v2464_v32  ;;  %v429_v21 = vld [vmem:[%s2539_s20 + $0x28] sm:$0xf]  ;;  %v2615_v56 = vld [vmem:[%s2539_s20 + $0x30] sm:$0xf] }
  0x27   : > { %2248 = vmatprep.subr.msk.bf16.mxu1 %vm494_vm0, %v2544_v40  ;;  %v1194_v7 = vshll.u32 %v419_v59, 16  ;;  %v1205_v9 = vshrl.u32 %v421_v60, 16  ;;  %2249 = vmatprep.subr.msk.bf16.mxu0 %vm494_vm0, %v2058_v46  ;;  %v2032_v15 = vcombine.low %v419_v59, %v421_v60  ;;  %v1208_v16 = vshll.u32 %v421_v60, 16  ;;  %v2291_v22 = vld [vmem:[%s2575_s7] ss:$8 sps:$4 sm:$0xff]  }
  0x28   : > { %2176 = vmatprep.mubr.msk.bf16.mxu0 %vm481_vm2, %v2025_v62  ;;  %v2595_v13 = vsel %vm2505_vm5, %v800_v63, %v804_v61  ;;  %v814_v32 = vrot.slane %v813_v0, 4  ;;  %v1193_v23 = vrot.slane %v1191_v3, 4  ;;  %v1219_v25 = vshrl.u32 %v423_v10, 16  ;;  %v2293_v60 = vld [vmem:[%s2575_s7 + $0x10] ss:$8 sps:$4 sm:$0xff]  }
  0x29   : > { %v1196_v24 = vrot.slane %v1194_v7, 5  ;;  %v1222_v28 = vshll.u32 %v423_v10, 16  ;;  %v1233_v29 = vshrl.u32 %v425_v18, 16  ;;  %v1236_v30 = vshll.u32 %v425_v18, 16  ;;  %v420_v61 = vld [vmem:[%s2539_s20 + $0x4] sm:$0x1] }
  0x2a   : > { %v2603_v5 = vsel %vm2505_vm5, %v814_v32, %v818_v1  ;;  %v1207_v33 = vrot.slane %v1205_v9, 4  ;;  %v1210_v36 = vrot.slane %v1208_v16, 5  ;;  %v1247_v38 = vshrl.u32 %v427_v20, 16  ;;  %v2294_v0 = vld [vmem:[%s2575_s7 + $0x20] ss:$8 sps:$4 sm:$0xff]  }
  0x2b   : > { %v2026_v26 = vcombine.low %v2595_v13, %v2603_v5  ;;  %v1250_v39 = vshll.u32 %v427_v20, 16  ;;  %v1261_v41 = vshrl.u32 %v429_v21, 16  ;;  %v1337_v44 = vsel %vm494_vm0, %v2544_v40, 0  ;;  %v422_v1 = vld [vmem:[%s2539_s20 + $0xc] sm:$0x1] }
  0x2c   : > { %2167 = vmatmul.mubr.msk.bf16.gmra.mxu1 %vm481_vm2, %v2017_v2  ;;  %v1449_v45 = vsel %vm494_vm0, %v2058_v46, 0  ;;  %v2033_v48 = vcombine.low %v423_v10, %v425_v18  ;;  %v1221_v50 = vrot.slane %v1219_v25, 4  ;;  %v2034_v51 = vcombine.low %v427_v20, %v429_v21  ;;  %v433_v46 = vld [vmem:[%s2539_s20 + $0x38] sm:$0xf]  ;;  %v2625_v7 = vld [vmem:[%s2820_s4 + $0xe] sm:$0x3] }
  0x2d   : > { %2182 = vmatprep.mubr.msk.bf16.mxu1 %vm481_vm2, %v2032_v15  ;;  %2177 = vmatmul.mubr.msk.bf16.gmra.mxu0 %vm481_vm2, %v2026_v26  ;;  %v1264_v53 = vshll.u32 %v429_v21, 16  ;;  %v1224_v57 = vrot.slane %v1222_v28, 5  ;;  %v1235_v58 = vrot.slane %v1233_v29, 4  ;;  %v1238_v59 = vrot.slane %v1236_v30, 5  ;;  %v424_v16 = vld [vmem:[%s2539_s20 + $0x14] sm:$0x1] }
  0x2e   : > { %2192 = vmatprep.mubr.msk.bf16.mxu0 %vm481_vm2, %v2291_v22  ;;  %v1197_v40 = vor.u32 %v1196_v24, %v1193_v23  ;;  %v1249_v62 = vrot.slane %v1247_v38, 4  ;;  %v1252_v63 = vrot.slane %v1250_v39, 5  ;;  %v1200_v2 = vshll.u32 %v420_v61, 16  ;;  %v426_v23 = vld [vmem:[%s2539_s20 + $0x1c] sm:$0x1] }
  0x2f   : > { %v1211_v3 = vor.u32 %v1210_v36, %v1207_v33  ;;  %v1263_v9 = vrot.slane %v1261_v41, 4  ;;  %v1275_v10 = vshrl.u32 %v2615_v56, 16  ;;  %v1214_v15 = vshll.u32 %v422_v1, 16  ;;  %v428_v29 = vld [vmem:[%s2539_s20 + $0x24] sm:$0x1] }
  0x30   : > { %v1198_v32 = vrot.slane %v1197_v40, 4  ;;  %v1266_v18 = vrot.slane %v1264_v53, 5  ;;  %v1278_v20 = vshll.u32 %v2615_v56, 16  ;;  %v1202_v21 = vrot.slane %v1200_v2, 5  ;;  %v430_v38 = vld [vmem:[%s2539_s20 + $0x2c] sm:$0x1] }
  0x31   : > { %v1212_v22 = vrot.slane %v1211_v3, 4  ;;  %v1289_v24 = vshrl.u32 %v433_v46, 16  ;;  %v1216_v25 = vrot.slane %v1214_v15, 5  ;;  %v1225_v26 = vor.u32 %v1224_v57, %v1221_v50  ;;  %v2076_v39 = vld [vmem:[%s2820_s4 + $0x10] sm:$0x3] }
  0x32   : > { %v1228_v28 = vshll.u32 %v424_v16, 16  ;;  %v1292_v30 = vshll.u32 %v433_v46, 16  ;;  %v1239_v33 = vor.u32 %v1238_v59, %v1235_v58  ;;  %v1242_v36 = vshll.u32 %v426_v23, 16 }
  0x33   : > { %v1203_v41 = vsel %vm2505_vm5, %v1198_v32, %v1202_v21  ;;  %v1253_v50 = vor.u32 %v1252_v63, %v1249_v62  ;;  %v1277_v53 = vrot.slane %v1275_v10, 4  ;;  %v1280_v57 = vrot.slane %v1278_v20, 5 }
  0x34   : > { %2183 = vmatmul.mubr.msk.bf16.vlgmr.msra.gmra.mxu1 %vm481_vm2, %v2033_v48  ;;  %v1217_v48 = vsel %vm2505_vm5, %v1212_v22, %v1216_v25  ;;  %v1267_v58 = vor.u32 %v1266_v18, %v1263_v9  ;;  %v1291_v59 = vrot.slane %v1289_v24, 4  ;;  %v1226_v61 = vrot.slane %v1225_v26, 4 }
  0x35   : > { %2186 = vmatprep.mubr.msk.bf16.mxu1 %vm481_vm2, %v2034_v51  ;;  %2201 = vmatpush3.bf16.msra.mxu1 %v1337_v44  ;;  %v1256_v51 = vshll.u32 %v428_v29, 16  ;;  %v2035_v44 = vcombine.low %v2615_v56, %v433_v46  ;;  %v1230_v40 = vrot.slane %v1228_v28, 5  ;;  %v1270_v1 = vshll.u32 %v430_v38, 16  ;;  %v432_v56 = vld [vmem:[%s2539_s20 + $0x34] sm:$0x1] }
  0x36   : > { %2193 = vmatmul.mubr.msk.bf16.vlgmr.msra.gmra.mxu0 %vm481_vm2, %v2293_v60  ;;  %2250 = vmatprep.subr.msk.bf16.mxu1 %vm494_vm0, %v2625_v7  ;;  %v2295_v60 = vld [vmem:[%s2575_s7 + $0x30] ss:$8 sps:$4 sm:$0xff]   ;;  %v1294_v62 = vrot.slane %v1292_v30, 5  ;;  %v2050_v63 = vcombine.low %v1203_v41, %v1217_v48  ;;  %v1240_v2 = vrot.slane %v1239_v33, 4  ;;  %v1244_v3 = vrot.slane %v1242_v36, 5 }
  0x37   : > { %2196 = vmatprep.mubr.msk.bf16.mxu0 %vm481_vm2, %v2294_v0  ;;  %2211 = vmatpush3.bf16.msra.mxu0 %v1449_v45  ;;  %v1254_v46 = vrot.slane %v1253_v50, 4  ;;  %v1258_v10 = vrot.slane %v1256_v51, 5  ;;  %v1268_v32 = vrot.slane %v1267_v58, 4  ;;  %v1272_v15 = vrot.slane %v1270_v1, 5  ;;  %v434_v0 = vld [vmem:[%s2539_s20 + $0x3c] sm:$0x1] }
  0x38   : > { %2251 = vmatprep.subr.msk.bf16.mxu0 %vm494_vm0, %v2076_v39  ;;  %v2059_v45 = vcombine.low %v2431_v11, %v2452_v27  ;;  %v1231_v9 = vsel %vm2505_vm5, %v1226_v61, %v1230_v40  ;;  %v1281_v16 = vor.u32 %v1280_v57, %v1277_v53  ;;  %v1245_v18 = vsel %vm2505_vm5, %v1240_v2, %v1244_v3  ;;  %v409_v53 = vld [vmem:[%s2416_s12 + $0x44] sm:$0x1]  ;;  %v453_v3 = vld [vmem:[#allocation2 + $0x8] sm:$0xff] }
  0x39   : > { %v1284_v20 = vshll.u32 %v432_v56, 16  ;;  %v1295_v21 = vor.u32 %v1294_v62, %v1291_v59  ;;  %v1298_v22 = vshll.u32 %v434_v0, 16  ;;  %v1259_v23 = vsel %vm2505_vm5, %v1254_v46, %v1258_v10  ;;  %v456_v1 = vld [vmem:[#allocation2 + $0x20] sm:$0xff]  ;;  %v455_v62 = vld [vmem:[#allocation2 + $0x18] sm:$0xff] }
  0x3a   : > { %v1273_v11 = vsel %vm2505_vm5, %v1268_v32, %v1272_v15  ;;  %v2051_v27 = vcombine.low %v1231_v9, %v1245_v18  ;;  %v1282_v24 = vrot.slane %v1281_v16, 4  ;;  %v2060_v30 = vcombine.low %v2434_v12, %v2439_v17  ;;  %v408_v12 = vld [vmem:[%s2416_s12 + $0x40] sm:$0xf]  ;;  %v457_v15 = vld [vmem:[#allocation2 + $0x28] sm:$0xff] }
  0x3b   : > { %v2052_v25 = vcombine.low %v1259_v23, %v1273_v11  ;;  %v1286_v26 = vrot.slane %v1284_v20, 5  ;;  %v1296_v28 = vrot.slane %v1295_v21, 4  ;;  %v1300_v29 = vrot.slane %v1298_v22, 5 }
  0x3c   : > { %2187 = vmatmul.mubr.msk.bf16.gmra.mxu1 %vm481_vm2, %v2035_v44  ;;  %v1561_v33 = vsel %vm494_vm0, %v2625_v7, 0  ;;  %v2061_v36 = vcombine.low %v2443_v19, %v2461_v31  ;;  %v1686_v38 = vsel %vm494_vm0, %v2076_v39, 0  ;;  %v1645_v17 = vshrl.u32 %v408_v12, 16 }
  0x3d   : > { %2202 = vmatprep.mubr.msk.bf16.mxu1 %vm481_vm2, %v2050_v63  ;;  %v1287_v41 = vsel %vm2505_vm5, %v1282_v24, %v1286_v26  ;;  %v1301_v48 = vsel %vm2505_vm5, %v1296_v28, %v1300_v29  ;;  %v1648_v19 = vshll.u32 %v408_v12, 16  ;;  %v2068_v7 = vcombine.low %v2478_v47, %v2485_v52 }
  0x3e   : > { %2197 = vmatmul.mubr.msk.bf16.gmra.mxu0 %vm481_vm2, %v2295_v60  ;;  %v2053_v31 = vcombine.low %v1287_v41, %v1301_v48  ;;  %v2062_v39 = vcombine.low %v2471_v37, %v408_v12  ;;  %v1647_v50 = vrot.slane %v1645_v17, 4  ;;  %v2077_v44 = vcombine.low %v2528_v34, %v2532_v35  ;;  %v418_v60 = vld [vmem:[%s2458_s17 + $0x40] sm:$0xf]  ;;  %s2787_s17 = scalar_lea.vmem %s2822_s6, %s2096_s14 }
  0x3f   : > { %2212 = vmatprep.mubr.msk.bf16.mxu0 %vm481_vm2, %v2059_v45  ;;  %v1650_v51 = vrot.slane %v1648_v19, 5  ;;  %v1654_v58 = vshll.u32 %v409_v53, 16  ;;  %v2069_v37 = vcombine.low %v2488_v55, %v2512_v6  ;;  %v2070_v47 = vcombine.low %v2515_v14, %v2552_v43 }
  0x40   : > { %v2078_v52 = vcombine.low %v2549_v42, %v2567_v54  ;;  %v2079_v34 = vcombine.low %v2581_v8, %v2595_v13  ;;  %v2071_v6 = vcombine.low %v2561_v49, %v418_v60  ;;  %v454_v42 = vld [vmem:[#allocation2 + $0x10] sm:$0xff]  ;;  %v452_v8 = vld [vmem:[#allocation2] sm:$0xff]  ;;  %vm1832_vm6 = vcmask 125952  }
  0x41   : > { %v1651_v57 = vor.u32 %v1650_v51, %v1647_v50  ;;  %v1656_v59 = vrot.slane %v1654_v58, 5  ;;  %v458_v54 = vld [vmem:[#allocation2 + $0x30] sm:$0xff] }
  0x43   : > { %v1652_v35 = vrot.slane %v1651_v57, 4 }
  0x44   : > { %2203 = vmatmul.mubr.msk.bf16.vlgmr.msra.gmra.mxu1 %vm481_vm2, %v2051_v27 }
  0x45   : > { %2206 = vmatprep.mubr.msk.bf16.mxu1 %vm481_vm2, %v2052_v25  ;;  %2221 = vmatpush3.bf16.msra.mxu1 %v1561_v33  ;;  %v1657_v55 = vsel %vm2505_vm5, %v1652_v35, %v1656_v59 }
  0x46   : > { %2213 = vmatmul.mubr.msk.bf16.vlgmr.msra.gmra.mxu0 %vm481_vm2, %v2060_v30  ;;  %v2080_v14 = vcombine.low %v2603_v5, %v1657_v55  ;;  %v459_v5 = vld [vmem:[#allocation2 + $0x38] sm:$0xff] }
  0x47   : > { %2216 = vmatprep.mubr.msk.bf16.mxu0 %vm481_vm2, %v2061_v36  ;;  %2231 = vmatpush3.bf16.msra.mxu0 %v1686_v38 }
  0x4c   : > { %2207 = vmatmul.mubr.msk.bf16.gmra.mxu1 %vm481_vm2, %v2053_v31 }
  0x4d   : > { %2222 = vmatprep.mubr.msk.bf16.mxu1 %vm481_vm2, %v2068_v7 }
  0x4e   : > { %2217 = vmatmul.mubr.msk.bf16.gmra.mxu0 %vm481_vm2, %v2062_v39 }
  0x4f   : > { %2232 = vmatprep.mubr.msk.bf16.mxu0 %vm481_vm2, %v2077_v44 }
  0x54   : > { %2223 = vmatmul.mubr.msk.bf16.vlgmr.msra.gmra.mxu1 %vm481_vm2, %v2069_v37 }
  0x55   : > { %2226 = vmatprep.mubr.msk.bf16.mxu1 %vm481_vm2, %v2070_v47 }
  0x56   : > { %2233 = vmatmul.mubr.msk.bf16.vlgmr.msra.gmra.mxu0 %vm481_vm2, %v2078_v52 }
  0x57   : > { %2236 = vmatprep.mubr.msk.bf16.mxu0 %vm481_vm2, %v2079_v34 }
  0x5c   : > { %2227 = vmatmul.mubr.msk.bf16.gmra.mxu1 %vm481_vm2, %v2071_v6 }
  0x5e   : > { %2237 = vmatmul.mubr.msk.bf16.gmra.mxu0 %vm481_vm2, %v2080_v14 }
  0xda   : > { %v2154_v43 = vpop.f32.mrf.mxu0 }
  0xdb   : > { %v565_v13 = vadd.f32 %v2154_v43, %v454_v42 }
  0xdc   : > { %v2158_v61 = vpop.f32.mrf.mxu1  ;;  %v532_v40 = vpop.f32.mrf.mxu0 }
  0xdd   : > { %573 = vst.msk [vmem:[#allocation2 + $0x10] sm:$0xff] %vm443_vm1, %v565_v13  ;;  %v569_v4 = vadd.f32 %v2158_v61, %v458_v54  ;;  %v563_v63 = vadd.f32 %v532_v40, %v452_v8 }
  0xde   : > { %v548_v49 = vpop.f32.mrf.mxu1  ;;  %v2155_v2 = vpop.f32.mrf.mxu0 }
  0xdf   : > { %577 = vst.msk [vmem:[#allocation2 + $0x30] sm:$0xff] %vm443_vm1, %v569_v4  ;;  %571 = vst.msk [vmem:[#allocation2] sm:$0xff] %vm443_vm1, %v563_v63  ;;  %v567_v56 = vadd.f32 %v548_v49, %v456_v1  ;;  %v566_v46 = vadd.f32 %v2155_v2, %v455_v62 }
  0xe0   : > { %v2159_v10 = vpop.f32.mrf.mxu1  ;;  %v535_v32 = vpop.f32.mrf.mxu0 }
  0xe1   : > { %575 = vst.msk [vmem:[#allocation2 + $0x20] sm:$0xff] %vm443_vm1, %v567_v56  ;;  %574 = vst.msk [vmem:[#allocation2 + $0x18] sm:$0xff] %vm443_vm1, %v566_v46  ;;  %v570_v0 = vadd.f32 %v2159_v10, %v459_v5  ;;  %v564_v45 = vadd.f32 %v535_v32, %v453_v3 }
  0xe2   : > { %v551_v9 = vpop.f32.mrf.mxu1 }
  0xe3   : > { %578 = vst.msk [vmem:[#allocation2 + $0x38] sm:$0xff] %vm443_vm1, %v570_v0  ;;  %572 = vst.msk [vmem:[#allocation2 + $0x8] sm:$0xff] %vm443_vm1, %v564_v45  ;;  %v568_v16 = vadd.f32 %v551_v9, %v457_v15 }
  0xe4   : > { %v581_v18 = vld [vmem:[#allocation2 + $0x10] sm:$0xff]  ;;  %v2164_v20 = vpop.f32.mrf.mxu1 }
  0xe5   : > { %576 = vst.msk [vmem:[#allocation2 + $0x28] sm:$0xff] %vm443_vm1, %v568_v16  ;;  %v691_v21 = vadd.f32 %v2164_v20, %v581_v18  ;;  %v2174_v11 = vpop.f32.mrf.mxu0 }
  0xe6   : > { %v579_v22 = vld [vmem:[#allocation2] sm:$0xff]  ;;  %v658_v23 = vpop.f32.mrf.mxu1  ;;  %v585_v38 = vld [vmem:[#allocation2 + $0x30] sm:$0xff] }
  0xe7   : > { %699 = vst.msk [vmem:[#allocation2 + $0x10] sm:$0xff] %vm443_vm1, %v691_v21  ;;  %v689_v27 = vadd.f32 %v658_v23, %v579_v22  ;;  %v891_v26 = vpop.f32.mrf.mxu0 }
  0xe8   : > { %v582_v24 = vld [vmem:[#allocation2 + $0x18] sm:$0xff]  ;;  %v2165_v25 = vpop.f32.mrf.mxu1  ;;  %v583_v19 = vld [vmem:[#allocation2 + $0x20] sm:$0xff] }
  0xe9   : > { %697 = vst.msk [vmem:[#allocation2] sm:$0xff] %vm443_vm1, %v689_v27  ;;  %v692_v28 = vadd.f32 %v2165_v25, %v582_v24  ;;  %v2175_v33 = vpop.f32.mrf.mxu0 }
  0xea   : > { %v580_v29 = vld [vmem:[#allocation2 + $0x8] sm:$0xff]  ;;  %v661_v30 = vpop.f32.mrf.mxu1  ;;  %v586_v44 = vld [vmem:[#allocation2 + $0x38] sm:$0xff] }
  0xeb   : > { %700 = vst.msk [vmem:[#allocation2 + $0x18] sm:$0xff] %vm443_vm1, %v692_v28  ;;  %v690_v36 = vadd.f32 %v661_v30, %v580_v29  ;;  %v894_v48 = vpop.f32.mrf.mxu0 }
  0xec   : > { %v2168_v41 = vpop.f32.mrf.mxu1  ;;  %v584_v52 = vld [vmem:[#allocation2 + $0x28] sm:$0xff] }
  0xed   : > { %698 = vst.msk [vmem:[#allocation2 + $0x8] sm:$0xff] %vm443_vm1, %v690_v36  ;;  %v695_v12 = vadd.f32 %v2168_v41, %v585_v38  ;;  %v2178_v7 = vpop.f32.mrf.mxu0 }
  0xee   : > { %v822_v17 = vld [vmem:[#allocation2 + $0x10] sm:$0xff]  ;;  %v674_v31 = vpop.f32.mrf.mxu1 }
  0xef   : > { %v924_v39 = vadd.f32 %v2174_v11, %v822_v17  ;;  %703 = vst.msk [vmem:[#allocation2 + $0x30] sm:$0xff] %vm443_vm1, %v695_v12  ;;  %v693_v50 = vadd.f32 %v674_v31, %v583_v19  ;;  %v907_v57 = vpop.f32.mrf.mxu0 }
  0xf0   : > { %v820_v51 = vld [vmem:[#allocation2] sm:$0xff]  ;;  %v2169_v53 = vpop.f32.mrf.mxu1 }
  0xf1   : > { %932 = vst.msk [vmem:[#allocation2 + $0x10] sm:$0xff] %vm443_vm1, %v924_v39  ;;  %v922_v58 = vadd.f32 %v891_v26, %v820_v51  ;;  %701 = vst.msk [vmem:[#allocation2 + $0x20] sm:$0xff] %vm443_vm1, %v693_v50  ;;  %v696_v37 = vadd.f32 %v2169_v53, %v586_v44  ;;  %v2179_v35 = vpop.f32.mrf.mxu0 }
  0xf2   : > { %v823_v47 = vld [vmem:[#allocation2 + $0x18] sm:$0xff]  ;;  %v677_v34 = vpop.f32.mrf.mxu1 }
  0xf3   : > { %930 = vst.msk [vmem:[#allocation2] sm:$0xff] %vm443_vm1, %v922_v58  ;;  %v925_v59 = vadd.f32 %v2175_v33, %v823_v47  ;;  %704 = vst.msk [vmem:[#allocation2 + $0x38] sm:$0xff] %vm443_vm1, %v696_v37  ;;  %v694_v60 = vadd.f32 %v677_v34, %v584_v52  ;;  %v910_v14 = vpop.f32.mrf.mxu0 }
  0xf4   : > { %v821_v55 = vld [vmem:[#allocation2 + $0x8] sm:$0xff]  ;;  %v2184_v6 = vpop.f32.mrf.mxu1 }
  0xf5   : > { %933 = vst.msk [vmem:[#allocation2 + $0x18] sm:$0xff] %vm443_vm1, %v925_v59  ;;  %v923_v42 = vadd.f32 %v894_v48, %v821_v55  ;;  %702 = vst.msk [vmem:[#allocation2 + $0x28] sm:$0xff] %vm443_vm1, %v694_v60 }
  0xf6   : > { %v826_v43 = vld [vmem:[#allocation2 + $0x30] sm:$0xff]  ;;  %v1017_v54 = vpop.f32.mrf.mxu1  ;;  %v2194_v8 = vpop.f32.mrf.mxu0 }
  0xf7   : > { %931 = vst.msk [vmem:[#allocation2 + $0x8] sm:$0xff] %vm443_vm1, %v923_v42  ;;  %v928_v13 = vadd.f32 %v2178_v7, %v826_v43 }
  0xf8   : > { %v824_v61 = vld [vmem:[#allocation2 + $0x20] sm:$0xff]  ;;  %v940_v40 = vld [vmem:[#allocation2 + $0x10] sm:$0xff]  ;;  %v2185_v1 = vpop.f32.mrf.mxu1  ;;  %v1143_v62 = vpop.f32.mrf.mxu0 }
  0xf9   : > { %936 = vst.msk [vmem:[#allocation2 + $0x30] sm:$0xff] %vm443_vm1, %v928_v13  ;;  %v926_v4 = vadd.f32 %v907_v57, %v824_v61  ;;  %v1050_v63 = vadd.f32 %v2184_v6, %v940_v40 }
  0xfa   : > { %v827_v49 = vld [vmem:[#allocation2 + $0x38] sm:$0xff]  ;;  %v938_v2 = vld [vmem:[#allocation2] sm:$0xff]  ;;  %v1020_v5 = vpop.f32.mrf.mxu1  ;;  %v2195_v3 = vpop.f32.mrf.mxu0 }
  0xfb   : > { %934 = vst.msk [vmem:[#allocation2 + $0x20] sm:$0xff] %vm443_vm1, %v926_v4  ;;  %v929_v56 = vadd.f32 %v2179_v35, %v827_v49  ;;  %1058 = vst.msk [vmem:[#allocation2 + $0x10] sm:$0xff] %vm443_vm1, %v1050_v63  ;;  %v1048_v46 = vadd.f32 %v1017_v54, %v938_v2 }
  0xfc   : > { %v825_v10 = vld [vmem:[#allocation2 + $0x28] sm:$0xff]  ;;  %v941_v32 = vld [vmem:[#allocation2 + $0x18] sm:$0xff]  ;;  %v2188_v15 = vpop.f32.mrf.mxu1  ;;  %v1146_v0 = vpop.f32.mrf.mxu0 }
  0xfd   : > { %937 = vst.msk [vmem:[#allocation2 + $0x38] sm:$0xff] %vm443_vm1, %v929_v56  ;;  %v927_v45 = vadd.f32 %v910_v14, %v825_v10  ;;  %1056 = vst.msk [vmem:[#allocation2] sm:$0xff] %vm443_vm1, %v1048_v46  ;;  %v1051_v9 = vadd.f32 %v2185_v1, %v941_v32 }
  0xfe   : > { %v939_v16 = vld [vmem:[#allocation2 + $0x8] sm:$0xff]  ;;  %v1033_v18 = vpop.f32.mrf.mxu1  ;;  %v2198_v20 = vpop.f32.mrf.mxu0 }
  0xff   : > { %935 = vst.msk [vmem:[#allocation2 + $0x28] sm:$0xff] %vm443_vm1, %v927_v45  ;;  %1059 = vst.msk [vmem:[#allocation2 + $0x18] sm:$0xff] %vm443_vm1, %v1051_v9  ;;  %v1049_v21 = vadd.f32 %v1020_v5, %v939_v16 }
 0x100   : > { %v944_v22 = vld [vmem:[#allocation2 + $0x30] sm:$0xff]  ;;  %v2189_v23 = vpop.f32.mrf.mxu1  ;;  %v1159_v11 = vpop.f32.mrf.mxu0 }
 0x101   : > { %1057 = vst.msk [vmem:[#allocation2 + $0x8] sm:$0xff] %vm443_vm1, %v1049_v21  ;;  %v1054_v27 = vadd.f32 %v2188_v15, %v944_v22 }
 0x102   : > { %v1066_v24 = vld [vmem:[#allocation2 + $0x10] sm:$0xff]  ;;  %v942_v25 = vld [vmem:[#allocation2 + $0x20] sm:$0xff]  ;;  %v1036_v26 = vpop.f32.mrf.mxu1  ;;  %v2199_v28 = vpop.f32.mrf.mxu0 }
 0x103   : > { %1062 = vst.msk [vmem:[#allocation2 + $0x30] sm:$0xff] %vm443_vm1, %v1054_v27  ;;  %v1176_v29 = vadd.f32 %v2194_v8, %v1066_v24  ;;  %v1052_v30 = vadd.f32 %v1033_v18, %v942_v25 }
 0x104   : > { %v1064_v33 = vld [vmem:[#allocation2] sm:$0xff]  ;;  %v945_v36 = vld [vmem:[#allocation2 + $0x38] sm:$0xff]  ;;  %v2204_v38 = vpop.f32.mrf.mxu1  ;;  %v1162_v41 = vpop.f32.mrf.mxu0 }
 0x105   : > { %1184 = vst.msk [vmem:[#allocation2 + $0x10] sm:$0xff] %vm443_vm1, %v1176_v29  ;;  %1060 = vst.msk [vmem:[#allocation2 + $0x20] sm:$0xff] %vm443_vm1, %v1052_v30  ;;  %v1174_v48 = vadd.f32 %v1143_v62, %v1064_v33  ;;  %v1055_v12 = vadd.f32 %v2189_v23, %v945_v36 }
 0x106   : > { %v1067_v17 = vld [vmem:[#allocation2 + $0x18] sm:$0xff]  ;;  %v943_v19 = vld [vmem:[#allocation2 + $0x28] sm:$0xff]  ;;  %v1373_v31 = vpop.f32.mrf.mxu1  ;;  %v2214_v7 = vpop.f32.mrf.mxu0 }
 0x107   : > { %1182 = vst.msk [vmem:[#allocation2] sm:$0xff] %vm443_vm1, %v1174_v48  ;;  %1063 = vst.msk [vmem:[#allocation2 + $0x38] sm:$0xff] %vm443_vm1, %v1055_v12  ;;  %v1177_v39 = vadd.f32 %v2195_v3, %v1067_v17  ;;  %v1053_v50 = vadd.f32 %v1036_v26, %v943_v19 }
 0x108   : > { %v1065_v51 = vld [vmem:[#allocation2 + $0x8] sm:$0xff]  ;;  %v2205_v44 = vpop.f32.mrf.mxu1  ;;  %v1485_v53 = vpop.f32.mrf.mxu0 }
 0x109   : > { %1185 = vst.msk [vmem:[#allocation2 + $0x18] sm:$0xff] %vm443_vm1, %v1177_v39  ;;  %1061 = vst.msk [vmem:[#allocation2 + $0x28] sm:$0xff] %vm443_vm1, %v1053_v50  ;;  %v1175_v57 = vadd.f32 %v1146_v0, %v1065_v51 }
 0x10a   : > { %v1070_v58 = vld [vmem:[#allocation2 + $0x30] sm:$0xff]  ;;  %v1376_v37 = vpop.f32.mrf.mxu1  ;;  %v2215_v47 = vpop.f32.mrf.mxu0 }
 0x10b   : > { %1183 = vst.msk [vmem:[#allocation2 + $0x8] sm:$0xff] %vm443_vm1, %v1175_v57  ;;  %v1180_v52 = vadd.f32 %v2198_v20, %v1070_v58 }
 0x10c   : > { %v1068_v34 = vld [vmem:[#allocation2 + $0x20] sm:$0xff]  ;;  %v1304_v35 = vld [vmem:[#allocation2 + $0x10] sm:$0xff]  ;;  %v2208_v59 = vpop.f32.mrf.mxu1  ;;  %v1488_v60 = vpop.f32.mrf.mxu0 }
 0x10d   : > { %1188 = vst.msk [vmem:[#allocation2 + $0x30] sm:$0xff] %vm443_vm1, %v1180_v52  ;;  %v1178_v55 = vadd.f32 %v1159_v11, %v1068_v34  ;;  %v1406_v6 = vadd.f32 %v2204_v38, %v1304_v35 }
 0x10e   : > { %v1071_v14 = vld [vmem:[#allocation2 + $0x38] sm:$0xff]  ;;  %v1302_v42 = vld [vmem:[#allocation2] sm:$0xff]  ;;  %v1389_v43 = vpop.f32.mrf.mxu1  ;;  %v2218_v54 = vpop.f32.mrf.mxu0 }
 0x10f   : > { %1186 = vst.msk [vmem:[#allocation2 + $0x20] sm:$0xff] %vm443_vm1, %v1178_v55  ;;  %1414 = vst.msk [vmem:[#allocation2 + $0x10] sm:$0xff] %vm443_vm1, %v1406_v6  ;;  %v1181_v8 = vadd.f32 %v2199_v28, %v1071_v14  ;;  %v1404_v13 = vadd.f32 %v1373_v31, %v1302_v42 }
 0x110   : > { %v1069_v61 = vld [vmem:[#allocation2 + $0x28] sm:$0xff]  ;;  %v1305_v40 = vld [vmem:[#allocation2 + $0x18] sm:$0xff]  ;;  %v2209_v1 = vpop.f32.mrf.mxu1  ;;  %v1501_v2 = vpop.f32.mrf.mxu0 }
 0x111   : > { %1189 = vst.msk [vmem:[#allocation2 + $0x38] sm:$0xff] %vm443_vm1, %v1181_v8  ;;  %1412 = vst.msk [vmem:[#allocation2] sm:$0xff] %vm443_vm1, %v1404_v13  ;;  %v1179_v62 = vadd.f32 %v1162_v41, %v1069_v61  ;;  %v1407_v4 = vadd.f32 %v2205_v44, %v1305_v40 }
 0x112   : > { %v1303_v63 = vld [vmem:[#allocation2 + $0x8] sm:$0xff]  ;;  %v1392_v49 = vpop.f32.mrf.mxu1  ;;  %v2219_v15 = vpop.f32.mrf.mxu0 }
 0x113   : > { %1187 = vst.msk [vmem:[#allocation2 + $0x28] sm:$0xff] %vm443_vm1, %v1179_v62  ;;  %1415 = vst.msk [vmem:[#allocation2 + $0x18] sm:$0xff] %vm443_vm1, %v1407_v4  ;;  %v1405_v5 = vadd.f32 %v1376_v37, %v1303_v63 }
 0x114   : > { %v1308_v3 = vld [vmem:[#allocation2 + $0x30] sm:$0xff]  ;;  %v2224_v56 = vpop.f32.mrf.mxu1  ;;  %v1504_v11 = vpop.f32.mrf.mxu0 }
 0x115   : > { %1413 = vst.msk [vmem:[#allocation2 + $0x8] sm:$0xff] %vm443_vm1, %v1405_v5  ;;  %v1410_v46 = vadd.f32 %v2208_v59, %v1308_v3  ;;  %v2085_v3 = vld [vmem:[%s2821_s5] ss:$0 sm:$0xff] }
 0x116   : > { %v1306_v10 = vld [vmem:[#allocation2 + $0x20] sm:$0xff]  ;;  %v1422_v32 = vld [vmem:[#allocation2 + $0x10] sm:$0xff]  ;;  %v1597_v0 = vpop.f32.mrf.mxu1  ;;  %v2234_v28 = vpop.f32.mrf.mxu0 }
 0x117   : > { %1418 = vst.msk [vmem:[#allocation2 + $0x30] sm:$0xff] %vm443_vm1, %v1410_v46  ;;  %v1408_v45 = vadd.f32 %v1389_v43, %v1306_v10  ;;  %v1518_v9 = vadd.f32 %v2214_v7, %v1422_v32 }
 0x118   : > { %v1309_v16 = vld [vmem:[#allocation2 + $0x38] sm:$0xff]  ;;  %v1420_v18 = vld [vmem:[#allocation2] sm:$0xff]  ;;  %v2225_v27 = vpop.f32.mrf.mxu1  ;;  %v1722_v48 = vpop.f32.mrf.mxu0 }
 0x119   : > { %1416 = vst.msk [vmem:[#allocation2 + $0x20] sm:$0xff] %vm443_vm1, %v1408_v45  ;;  %1526 = vst.msk [vmem:[#allocation2 + $0x10] sm:$0xff] %vm443_vm1, %v1518_v9  ;;  %v1411_v20 = vadd.f32 %v2209_v1, %v1309_v16  ;;  %v1516_v21 = vadd.f32 %v1485_v53, %v1420_v18 }
 0x11a   : > { %v1307_v22 = vld [vmem:[#allocation2 + $0x28] sm:$0xff]  ;;  %v1423_v23 = vld [vmem:[#allocation2 + $0x18] sm:$0xff]  ;;  %v1600_v33 = vpop.f32.mrf.mxu1  ;;  %v2235_v53 = vpop.f32.mrf.mxu0 }
 0x11b   : > { %1419 = vst.msk [vmem:[#allocation2 + $0x38] sm:$0xff] %vm443_vm1, %v1411_v20  ;;  %1524 = vst.msk [vmem:[#allocation2] sm:$0xff] %vm443_vm1, %v1516_v21  ;;  %v1409_v24 = vadd.f32 %v1392_v49, %v1307_v22  ;;  %v1519_v25 = vadd.f32 %v2215_v47, %v1423_v23 }
 0x11c   : > { %v1421_v26 = vld [vmem:[#allocation2 + $0x8] sm:$0xff]  ;;  %v2228_v7 = vpop.f32.mrf.mxu1  ;;  %v1725_v35 = vpop.f32.mrf.mxu0 }
 0x11d   : > { %1417 = vst.msk [vmem:[#allocation2 + $0x28] sm:$0xff] %vm443_vm1, %v1409_v24  ;;  %1527 = vst.msk [vmem:[#allocation2 + $0x18] sm:$0xff] %vm443_vm1, %v1519_v25  ;;  %v1517_v29 = vadd.f32 %v1488_v60, %v1421_v26 }
 0x11e   : > { %v1426_v30 = vld [vmem:[#allocation2 + $0x30] sm:$0xff]  ;;  %v1613_v47 = vpop.f32.mrf.mxu1  ;;  %v2238_v8 = vpop.f32.mrf.mxu0 }
 0x11f   : > { %1525 = vst.msk [vmem:[#allocation2 + $0x8] sm:$0xff] %vm443_vm1, %v1517_v29  ;;  %v1522_v36 = vadd.f32 %v2218_v54, %v1426_v30 }
 0x120   : > { %v1424_v38 = vld [vmem:[#allocation2 + $0x20] sm:$0xff]  ;;  %v1534_v41 = vld [vmem:[#allocation2 + $0x10] sm:$0xff]  ;;  %v2229_v6 = vpop.f32.mrf.mxu1 }
 0x121   : > { %1530 = vst.msk [vmem:[#allocation2 + $0x30] sm:$0xff] %vm443_vm1, %v1522_v36  ;;  %v1520_v12 = vadd.f32 %v1501_v2, %v1424_v38  ;;  %v1630_v17 = vadd.f32 %v2224_v56, %v1534_v41  ;;  %v1738_v2 = vpop.f32.mrf.mxu0 }
 0x122   : > { %v1427_v19 = vld [vmem:[#allocation2 + $0x38] sm:$0xff]  ;;  %v1532_v31 = vld [vmem:[#allocation2] sm:$0xff]  ;;  %v1616_v1 = vpop.f32.mrf.mxu1 }
 0x123   : > { %1528 = vst.msk [vmem:[#allocation2 + $0x20] sm:$0xff] %vm443_vm1, %v1520_v12  ;;  %1638 = vst.msk [vmem:[#allocation2 + $0x10] sm:$0xff] %vm443_vm1, %v1630_v17  ;;  %v1523_v39 = vadd.f32 %v2219_v15, %v1427_v19  ;;  %v1628_v50 = vadd.f32 %v1597_v0, %v1532_v31  ;;  %v2239_v15 = vpop.f32.mrf.mxu0 }
 0x124   : > { %v1425_v51 = vld [vmem:[#allocation2 + $0x28] sm:$0xff]  ;;  %v1535_v44 = vld [vmem:[#allocation2 + $0x18] sm:$0xff] }
 0x125   : > { %1531 = vst.msk [vmem:[#allocation2 + $0x38] sm:$0xff] %vm443_vm1, %v1523_v39  ;;  %1636 = vst.msk [vmem:[#allocation2] sm:$0xff] %vm443_vm1, %v1628_v50  ;;  %v1521_v57 = vadd.f32 %v1504_v11, %v1425_v51  ;;  %v1631_v58 = vadd.f32 %v2225_v27, %v1535_v44  ;;  %v1741_v11 = vpop.f32.mrf.mxu0 }
 0x126   : > { %v1533_v37 = vld [vmem:[#allocation2 + $0x8] sm:$0xff] }
 0x127   : > { %1529 = vst.msk [vmem:[#allocation2 + $0x28] sm:$0xff] %vm443_vm1, %v1521_v57  ;;  %1639 = vst.msk [vmem:[#allocation2 + $0x18] sm:$0xff] %vm443_vm1, %v1631_v58  ;;  %v1629_v52 = vadd.f32 %v1600_v33, %v1533_v37 }
 0x128   : > { %v1538_v34 = vld [vmem:[#allocation2 + $0x30] sm:$0xff] }
 0x129   : > { %1637 = vst.msk [vmem:[#allocation2 + $0x8] sm:$0xff] %vm443_vm1, %v1629_v52  ;;  %v1634_v59 = vadd.f32 %v2228_v7, %v1538_v34 }
 0x12a   : > { %v1536_v60 = vld [vmem:[#allocation2 + $0x20] sm:$0xff]  ;;  %v1660_v55 = vld [vmem:[#allocation2 + $0x10] sm:$0xff] }
 0x12b   : > { %1642 = vst.msk [vmem:[#allocation2 + $0x30] sm:$0xff] %vm443_vm1, %v1634_v59  ;;  %v1632_v14 = vadd.f32 %v1613_v47, %v1536_v60  ;;  %v1755_v42 = vadd.f32 %v2234_v28, %v1660_v55 }
 0x12c   : > { %v1539_v43 = vld [vmem:[#allocation2 + $0x38] sm:$0xff]  ;;  %v1658_v54 = vld [vmem:[#allocation2] sm:$0xff] }
 0x12d   : > { %1640 = vst.msk [vmem:[#allocation2 + $0x20] sm:$0xff] %vm443_vm1, %v1632_v14  ;;  %1763 = vst.msk [vmem:[#allocation2 + $0x10] sm:$0xff] %vm443_vm1, %v1755_v42  ;;  %v1635_v13 = vadd.f32 %v2229_v6, %v1539_v43  ;;  %v1753_v61 = vadd.f32 %v1722_v48, %v1658_v54 }
 0x12e   : > { %v1537_v40 = vld [vmem:[#allocation2 + $0x28] sm:$0xff]  ;;  %v1661_v62 = vld [vmem:[#allocation2 + $0x18] sm:$0xff] }
 0x12f   : > { %1643 = vst.msk [vmem:[#allocation2 + $0x38] sm:$0xff] %vm443_vm1, %v1635_v13  ;;  %1761 = vst.msk [vmem:[#allocation2] sm:$0xff] %vm443_vm1, %v1753_v61  ;;  %v1633_v4 = vadd.f32 %v1616_v1, %v1537_v40  ;;  %v1756_v63 = vadd.f32 %v2235_v53, %v1661_v62 }
 0x130   : > { %v1659_v49 = vld [vmem:[#allocation2 + $0x8] sm:$0xff] }
 0x131   : > { %1641 = vst.msk [vmem:[#allocation2 + $0x28] sm:$0xff] %vm443_vm1, %v1633_v4  ;;  %1764 = vst.msk [vmem:[#allocation2 + $0x18] sm:$0xff] %vm443_vm1, %v1756_v63  ;;  %v1754_v5 = vadd.f32 %v1725_v35, %v1659_v49 }
 0x132   : > { %v1664_v56 = vld [vmem:[#allocation2 + $0x30] sm:$0xff] }
 0x133   : > { %1762 = vst.msk [vmem:[#allocation2 + $0x8] sm:$0xff] %vm443_vm1, %v1754_v5  ;;  %v1759_v46 = vadd.f32 %v2238_v8, %v1664_v56 }
 0x134   : > { %v1771_v10 = vld [vmem:[#allocation2 + $0x10] sm:$0xff]  ;;  %v1662_v32 = vld [vmem:[#allocation2 + $0x20] sm:$0xff] }
 0x135   : > { %v1786_v0 = vadd.f32 %v2085_v3, %v1771_v10  ;;  %1767 = vst.msk [vmem:[#allocation2 + $0x30] sm:$0xff] %vm443_vm1, %v1759_v46  ;;  %v1757_v45 = vadd.f32 %v1738_v2, %v1662_v32 }
 0x136   : > { %v1769_v9 = vld [vmem:[#allocation2] sm:$0xff]  ;;  %v1665_v16 = vld [vmem:[#allocation2 + $0x38] sm:$0xff] }
 0x137   : > { %v1794_v18 = vmax.f32 %v1786_v0, 0.0  ;;  %v1784_v20 = vadd.f32 %v2085_v3, %v1769_v9  ;;  %1765 = vst.msk [vmem:[#allocation2 + $0x20] sm:$0xff] %vm443_vm1, %v1757_v45  ;;  %v1760_v21 = vadd.f32 %v2239_v15, %v1665_v16 }
 0x138   : > { %v1772_v22 = vld [vmem:[#allocation2 + $0x18] sm:$0xff]  ;;  %v1663_v23 = vld [vmem:[#allocation2 + $0x28] sm:$0xff] }
 0x139   : > { %v2099_v27 = vpack.c.bf16 %v1794_v18, %v1794_v18  ;;  %v1792_v24 = vmax.f32 %v1784_v20, 0.0  ;;  %v1787_v25 = vadd.f32 %v2085_v3, %v1772_v22  ;;  %1768 = vst.msk [vmem:[#allocation2 + $0x38] sm:$0xff] %vm443_vm1, %v1760_v21  ;;  %v1758_v26 = vadd.f32 %v1741_v11, %v1663_v23 }
 0x13a   : > { %v1770_v28 = vld [vmem:[#allocation2 + $0x8] sm:$0xff] }
 0x13b   : > { %1835 = vst.msk [vmem:[%s2787_s17 + $0x8] sm:$0xf] %vm1832_vm6, %v2099_v27  ;;  %v2097_v29 = vpack.c.bf16 %v1792_v24, %v1792_v24  ;;  %v1795_v30 = vmax.f32 %v1787_v25, 0.0  ;;  %v1785_v33 = vadd.f32 %v2085_v3, %v1770_v28 }
 0x13c   : > { %1766 = vst.msk [vmem:[#allocation2 + $0x28] sm:$0xff] %vm443_vm1, %v1758_v26  ;;  %v1775_v36 = vld [vmem:[#allocation2 + $0x30] sm:$0xff] }
 0x13d   : > { %1833 = vst.msk [vmem:[%s2787_s17] sm:$0xf] %vm1832_vm6, %v2097_v29  ;;  %v2100_v38 = vpack.c.bf16 %v1795_v30, %v1795_v30  ;;  %v1793_v41 = vmax.f32 %v1785_v33, 0.0  ;;  %v1790_v48 = vadd.f32 %v2085_v3, %v1775_v36 }
 0x13e   : > { %v1773_v12 = vld [vmem:[#allocation2 + $0x20] sm:$0xff] }
 0x13f   : > { %1836 = vst.msk [vmem:[%s2787_s17 + $0xc] sm:$0xf] %vm1832_vm6, %v2100_v38  ;;  %v2098_v17 = vpack.c.bf16 %v1793_v41, %v1793_v41  ;;  %v1798_v19 = vmax.f32 %v1790_v48, 0.0  ;;  %v1788_v31 = vadd.f32 %v2085_v3, %v1773_v12 }
 0x140   : > { %v1776_v7 = vld [vmem:[#allocation2 + $0x38] sm:$0xff] }
 0x141   : > { %1834 = vst.msk [vmem:[%s2787_s17 + $0x4] sm:$0xf] %vm1832_vm6, %v2098_v17  ;;  %v2103_v39 = vpack.c.bf16 %v1798_v19, %v1798_v19  ;;  %v1796_v50 = vmax.f32 %v1788_v31, 0.0  ;;  %v1791_v51 = vadd.f32 %v2085_v3, %v1776_v7 }
 0x143   : > { %v1774_v44 = vld [vmem:[#allocation2 + $0x28] sm:$0xff]  ;;  %1839 = vst.msk [vmem:[%s2787_s17 + $0x18] sm:$0xf] %vm1832_vm6, %v2103_v39  ;;  %v2101_v53 = vpack.c.bf16 %v1796_v50, %v1796_v50  ;;  %v1799_v57 = vmax.f32 %v1791_v51, 0.0 }
 0x144   : > { %v1789_v58 = vadd.f32 %v2085_v3, %v1774_v44 }
 0x145   : > { %1837 = vst.msk [vmem:[%s2787_s17 + $0x10] sm:$0xf] %vm1832_vm6, %v2101_v53  ;;  %v2104_v37 = vpack.c.bf16 %v1799_v57, %v1799_v57 }
 0x146   : > { %v1797_v47 = vmax.f32 %v1789_v58, 0.0 }
 0x147   : > { %1840 = vst.msk [vmem:[%s2787_s17 + $0x1c] sm:$0xf] %vm1832_vm6, %v2104_v37 }
 0x148   : > { %v2102_v52 = vpack.c.bf16 %v1797_v47, %v1797_v47 }
 0x14a   : > { %1838 = vst.msk [vmem:[%s2787_s17 + $0x14] sm:$0xf] %vm1832_vm6, %v2102_v52 }
 0x14b PF: > { %s16_s23 = sadd.s32 1, %s2324_s23   ;;  %s2825_s21 = smov %s2320_s22 }
 0x14c   : > { %p13_p5 = scmp.ge.s32.totalorder %s16_s23, 4   ;;  %s2826_s22 = smov %s2828_s24 }
 0x14e   :  { %15 = sbr.rel (!%p13_p5) target bundleno = 2 (0x2), region = 91 }

</bundles_post_ra>
